<compile_context>
chip_gen: v5e
topology: v5e:2x2
jax: 0.10.0
libtpu: 0.0.40
codegen_flags: <defaults>
</compile_context>

<pallas_src>
import functools

import jax
import jax.numpy as jnp
from jax.experimental import pallas as pl
from jax.experimental.pallas import tpu as pltpu

BN_EPS = 1e-5


def _gin_fused_kernel(n_total,
                      a_ref, x_ref, w1_ref, b1_ref, w2_ref, b2_ref,
                      gamma_ref, beta_ref,
                      out_ref, pool_ref,
                      h_scr, z_scr, sum_scr, sq_scr):
    """phase 0: GINConv + MLP + BN-stat accumulation (per graph).
       phase 1: BN normalize + pooling + output stores + update resident h."""
    layer = pl.program_id(0)
    ph = pl.program_id(1)
    b = pl.program_id(2)

    @pl.when(ph == 0)
    def _compute_phase():
        # Layer 0 consumes the zero-padded input features; deeper layers read
        # the previous layer's output kept resident in VMEM (no HBM round trip).
        @pl.when(layer == 0)
        def _():
            h_scr[b] = x_ref[...]

        h = h_scr[b]
        # GINConv(sum, eps=0): z = (1+eps)*h + sum_{src->dst} h[src] = h + A_b @ h.
        # A is streamed as bf16 (exact for 0/1) and cast up; f32 MXU accumulate.
        agg = jnp.dot(a_ref[...].astype(jnp.float32), h,
                      preferred_element_type=jnp.float32)
        z = h + agg
        # apply_func: Linear -> ReLU -> Linear, then the outer F.relu.
        z1 = jnp.maximum(
            jnp.dot(z, w1_ref[...], preferred_element_type=jnp.float32)
            + b1_ref[...], 0.0)
        z2 = jnp.maximum(
            jnp.dot(z1, w2_ref[...], preferred_element_type=jnp.float32)
            + b2_ref[...], 0.0)
        z_scr[b] = z2

        # BatchNorm1d statistics are over ALL nodes of the batched graph:
        # accumulate sum / sum-of-squares across the graph sweep.
        @pl.when(b == 0)
        def _():
            sum_scr[...] = jnp.zeros_like(sum_scr)
            sq_scr[...] = jnp.zeros_like(sq_scr)
        sum_scr[...] += jnp.sum(z2, axis=0, keepdims=True)
        sq_scr[...] += jnp.sum(z2 * z2, axis=0, keepdims=True)

    @pl.when(ph == 1)
    def _finalize_phase():
        inv_n = 1.0 / n_total
        mean = sum_scr[...] * inv_n                               # (1, H)
        var = jnp.maximum(sq_scr[...] * inv_n - mean * mean, 0.0)  # biased var
        scale = jax.lax.rsqrt(var + BN_EPS) * gamma_ref[...]
        shift = beta_ref[...] - mean * scale

        y = z_scr[b] * scale + shift                              # (n_g, H)
        # TODO(synk): Dropout treated as identity (eval semantics); training
        # dropout would need pltpu.prng_* masking here.
        out_ref[...] = y          # lane-dense (128-wide) unmasked store
        h_scr[b] = y              # becomes the next layer's input (stays in VMEM)

        # Per-graph sum pooling, accumulated into the layer's resident [B, H]
        # pool block (masked add -> no dynamic sublane store needed).
        pooled = jnp.sum(y, axis=0, keepdims=True)                # (1, H)
        row_ids = jax.lax.broadcasted_iota(jnp.int32, (pool_ref.shape[0], 1), 0)

        @pl.when(b == 0)
        def _():
            pool_ref[...] = jnp.zeros_like(pool_ref)
        pool_ref[...] += jnp.where(row_ids == b, pooled, 0.0)


def gin_forward(a_blocks, x, layer_params):
    """Fused multi-layer GIN forward.

    a_blocks: [B, n_g, n_g] per-graph adjacency, A[b, dst, src] in {0, 1}.
    x:        [N, D] node features (N = B * n_g, graph-major node ordering).
    layer_params: per layer (w1 [in,H], b1 [H], w2 [H,H], b2 [H], gamma [H], beta [H]).
    Returns (graph_embeddings [B, L*H], node_features [N, L*H]) — the same
    (cat(xpool, -1), cat(xs, -1)) pair the PyTorch module returns.
    """
    num_graphs, n_g, _ = a_blocks.shape
    n_total, d_in = x.shape
    assert n_total == num_graphs * n_g
    num_layers = len(layer_params)
    hidden = layer_params[0][0].shape[1]
    # Alignment required by the lane-dense output BlockSpecs below.
    assert hidden % 128 == 0 and n_g % 8 == 0 and d_in <= hidden

    # Zero-pad features to `hidden` lanes, fold nodes into per-graph blocks,
    # and zero-pad layer-0's W1 rows to match -> every layer is a K=hidden
    # MXU-friendly matmul and weights stack along the layer grid axis.
    x_pad = jnp.zeros((num_graphs, n_g, hidden), jnp.float32)
    x_pad = x_pad.at[:, :, :d_in].set(
        x.reshape(num_graphs, n_g, d_in).astype(jnp.float32))

    w1s, b1s, w2s, b2s, gammas, betas = [], [], [], [], [], []
    for w1, b1, w2, b2, gamma, beta in layer_params:
        w1p = jnp.zeros((hidden, hidden), jnp.float32).at[:w1.shape[0], :].set(w1)
        w1s.append(w1p)
        w2s.append(w2.astype(jnp.float32))
        b1s.append(b1.reshape(1, hidden).astype(jnp.float32))
        b2s.append(b2.reshape(1, hidden).astype(jnp.float32))
        gammas.append(gamma.reshape(1, hidden).astype(jnp.float32))
        betas.append(beta.reshape(1, hidden).astype(jnp.float32))
    w1s, w2s = jnp.stack(w1s), jnp.stack(w2s)
    b1s, b2s = jnp.stack(b1s), jnp.stack(b2s)
    gammas, betas = jnp.stack(gammas), jnp.stack(betas)

    # Adjacency is 0/1 -> bf16 is exact and halves its HBM/VMEM footprint.
    a_bf16 = a_blocks.astype(jnp.bfloat16)

    def a_index(l, ph, b):
        # Needed only in phase 0; pin to the already-resident block during
        # phase 1 so no redundant HBM fetch is issued.
        return (jnp.where(ph == 0, b, num_graphs - 1), 0, 0)

    def x_index(l, ph, b):
        # Needed only for layer 0 / phase 0.
        first = jnp.logical_and(l == 0, ph == 0)
        return (jnp.where(first, b, 0), 0, 0)

    def layer_index(l, ph, b):
        # Per-layer params stay resident across the whole (phase, graph) sweep.
        return (l, 0, 0)

    kernel = functools.partial(_gin_fused_kernel, n_total)

    node_out, pool_out = pl.pallas_call(
        kernel,
        grid=(num_layers, 2, num_graphs),
        in_specs=[
            pl.BlockSpec((None, n_g, n_g), a_index),            # A_b (bf16)
            pl.BlockSpec((None, n_g, hidden), x_index),         # padded features
            pl.BlockSpec((None, hidden, hidden), layer_index),  # W1
            pl.BlockSpec((None, 1, hidden), layer_index),       # b1
            pl.BlockSpec((None, hidden, hidden), layer_index),  # W2
            pl.BlockSpec((None, 1, hidden), layer_index),       # b2
            pl.BlockSpec((None, 1, hidden), layer_index),       # gamma
            pl.BlockSpec((None, 1, hidden), layer_index),       # beta
        ],
        out_specs=[
            # Node slab [N, L*H]: graph b's rows / layer l's 128-wide column
            # block.  Pinned to block 0 during phase 0 so every block is fully
            # written (in phase 1) before it is evicted to HBM.
            pl.BlockSpec((n_g, hidden), lambda l, ph, b: (b * ph, l)),
            # Graph-embedding slab [B, L*H]: one column block per layer,
            # resident across the whole layer sweep.
            pl.BlockSpec((num_graphs, hidden), lambda l, ph, b: (0, l)),
        ],
        out_shape=(
            jax.ShapeDtypeStruct((n_total, num_layers * hidden), jnp.float32),
            jax.ShapeDtypeStruct((num_graphs, num_layers * hidden), jnp.float32),
        ),
        scratch_shapes=[
            pltpu.VMEM((num_graphs, n_g, hidden), jnp.float32),  # resident h
            pltpu.VMEM((num_graphs, n_g, hidden), jnp.float32),  # pre-BN activations
            pltpu.VMEM((1, hidden), jnp.float32),                # BN sum
            pltpu.VMEM((1, hidden), jnp.float32),                # BN sum of squares
        ],
        compiler_params=pltpu.CompilerParams(
            # Every grid axis carries state (resident h / BN stats / output
            # accumulation) -> no axis may be megacore-partitioned.
            dimension_semantics=("arbitrary", "arbitrary", "arbitrary"),
            vmem_limit_bytes=32 * 1024 * 1024,  # explicit, safe on v5e/v6e/v7x
        ),
    )(a_bf16, x_pad, w1s, b1s, w2s, b2s, gammas, betas)

    return pool_out, node_out


def _reference_forward(a_blocks, x, layer_params):
    """Pure-JAX reference (mirrors the PyTorch module's forward)."""
    num_graphs, n_g, _ = a_blocks.shape
    n_total = num_graphs * n_g
    h = x
    xs, xpool = [], []
    for (w1, b1, w2, b2, gamma, beta) in layer_params:
        hb = h.reshape(num_graphs, n_g, -1)
        agg = jnp.einsum("bij,bjd->bid", a_blocks, hb).reshape(n_total, -1)
        z = h + agg
        z1 = jnp.maximum(z @ w1 + b1, 0.0)
        z2 = jnp.maximum(z1 @ w2 + b2, 0.0)
        mean = jnp.mean(z2, axis=0, keepdims=True)
        var = jnp.mean((z2 - mean) ** 2, axis=0, keepdims=True)
        h = (z2 - mean) / jnp.sqrt(var + BN_EPS) * gamma + beta
        xs.append(h)
        xpool.append(jnp.sum(h.reshape(num_graphs, n_g, -1), axis=1))
    return jnp.concatenate(xpool, axis=-1), jnp.concatenate(xs, axis=-1)


if __name__ == "__main__":
    # Demo config consistent with the module's config dict:
    #   node_feature_dim=16, gcn_hidden_dim=128, gcn_graph_num_layers=2,
    #   dropout (identity in eval), batch of B=2 graphs with 128 nodes each.
    # TODO(synk): variable graph_len (unequal graph sizes) would need
    # scalar-prefetch offsets plus masked BN/pooling; demo uses equal sizes.
    node_feature_dim = 16
    hidden_dim = 128
    num_layers = 2
    nodes_per_graph = 128
    batch = 2
    n_total = batch * nodes_per_graph

    key = jax.random.PRNGKey(0)
    k_feat, k_adj, *k_params = jax.random.split(key, 2 + 4 * num_layers)

    x = jax.random.normal(k_feat, (n_total, node_feature_dim), dtype=jnp.float32)

    # Per-graph random 0/1 adjacency blocks A[b, dst, src] (the batched graph's
    # overall adjacency is block-diagonal).
    a_blocks = (jax.random.uniform(
        k_adj, (batch, nodes_per_graph, nodes_per_graph)) < 0.1).astype(jnp.float32)

    layer_params = []
    in_dim = node_feature_dim
    for i in range(num_layers):
        kw1, kb1, kw2, kb2 = k_params[4 * i:4 * (i + 1)]
        w1 = 0.1 * jax.random.normal(kw1, (in_dim, hidden_dim), jnp.float32)
        b1 = 0.1 * jax.random.normal(kb1, (hidden_dim,), jnp.float32)
        w2 = 0.1 * jax.random.normal(kw2, (hidden_dim, hidden_dim), jnp.float32)
        b2 = 0.1 * jax.random.normal(kb2, (hidden_dim,), jnp.float32)
        gamma = jnp.ones((hidden_dim,), jnp.float32)   # BatchNorm1d defaults
        beta = jnp.zeros((hidden_dim,), jnp.float32)
        layer_params.append((w1, b1, w2, b2, gamma, beta))
        in_dim = hidden_dim

    fwd = jax.jit(gin_forward)
    graph_out, node_out = fwd(a_blocks, x, layer_params)
    graph_out = jax.block_until_ready(graph_out)
    node_out = jax.block_until_ready(node_out)

    assert graph_out.shape == (batch, num_layers * hidden_dim)
    assert node_out.shape == (n_total, num_layers * hidden_dim)

    ref_graph, ref_node = _reference_forward(a_blocks, x, layer_params)
    assert jnp.allclose(node_out, ref_node, atol=1e-3, rtol=1e-3), (
        float(jnp.max(jnp.abs(node_out - ref_node))))
    assert jnp.allclose(graph_out, ref_graph, atol=1e-3, rtol=1e-3), (
        float(jnp.max(jnp.abs(graph_out - ref_graph))))

    print("KERNEL_OK")
</pallas_src>

<mosaic_0001>
module attributes {stable_mosaic.version = 11 : i64} {
  func.func @_gin_fused_kernel(%arg0: i32, %arg1: i32, %arg2: i32, %arg3: memref<1x128x128xbf16, #tpu.memory_space<vmem>>, %arg4: memref<1x128x128xf32, #tpu.memory_space<vmem>>, %arg5: memref<1x128x128xf32, #tpu.memory_space<vmem>>, %arg6: memref<1x1x128xf32, #tpu.memory_space<vmem>>, %arg7: memref<1x128x128xf32, #tpu.memory_space<vmem>>, %arg8: memref<1x1x128xf32, #tpu.memory_space<vmem>>, %arg9: memref<1x1x128xf32, #tpu.memory_space<vmem>>, %arg10: memref<1x1x128xf32, #tpu.memory_space<vmem>>, %arg11: memref<128x128xf32, #tpu.memory_space<vmem>>, %arg12: memref<2x128xf32, #tpu.memory_space<vmem>>, %arg13: memref<2x128x128xf32, #tpu.memory_space<vmem>>, %arg14: memref<2x128x128xf32, #tpu.memory_space<vmem>>, %arg15: memref<1x128xf32, #tpu.memory_space<vmem>>, %arg16: memref<1x128xf32, #tpu.memory_space<vmem>>) attributes {dimension_semantics = [#tpu.dimension_semantics<arbitrary>, #tpu.dimension_semantics<arbitrary>, #tpu.dimension_semantics<arbitrary>], iteration_bounds = array<i64: 2, 2, 2>, scalar_prefetch = 0 : i64, scratch_operands = 4 : i64, tpu.core_type = #tpu.core_type<tc>, window_params = [{transform_indices = @transform_0, window_bounds = array<i64: 1, 128, 128>}, {transform_indices = @transform_1, window_bounds = array<i64: 1, 128, 128>}, {transform_indices = @transform_2, window_bounds = array<i64: 1, 128, 128>}, {transform_indices = @transform_3, window_bounds = array<i64: 1, 1, 128>}, {transform_indices = @transform_4, window_bounds = array<i64: 1, 128, 128>}, {transform_indices = @transform_5, window_bounds = array<i64: 1, 1, 128>}, {transform_indices = @transform_6, window_bounds = array<i64: 1, 1, 128>}, {transform_indices = @transform_7, window_bounds = array<i64: 1, 1, 128>}, {transform_indices = @transform_8, window_bounds = array<i64: 128, 128>}, {transform_indices = @transform_9, window_bounds = array<i64: 2, 128>}]} {
    %c0_i32 = arith.constant 0 : i32
    %0 = arith.cmpi eq, %arg1, %c0_i32 : i32
    %1 = arith.extui %0 : i1 to i32
    %c0_i32_0 = arith.constant 0 : i32
    %2 = arith.cmpi ne, %1, %c0_i32_0 : i32
    scf.if %2 {
      %c0_i32_2 = arith.constant 0 : i32
      %6 = arith.cmpi eq, %arg0, %c0_i32_2 : i32
      %7 = arith.extui %6 : i1 to i32
      %c0_i32_3 = arith.constant 0 : i32
      %8 = arith.cmpi ne, %7, %c0_i32_3 : i32
      scf.if %8 {
        %c0_38 = arith.constant 0 : index
        %c0_39 = arith.constant 0 : index
        %c0_40 = arith.constant 0 : index
        %53 = vector.load %arg4[%c0_38, %c0_39, %c0_40] : memref<1x128x128xf32, #tpu.memory_space<vmem>>, vector<1x128x128xf32>
        %54 = vector.shape_cast %53 : vector<1x128x128xf32> to vector<128x128xf32>
        %55 = arith.index_cast %arg2 : i32 to index
        %c0_41 = arith.constant 0 : index
        %c0_42 = arith.constant 0 : index
        %56 = vector.load %arg13[%55, %c0_41, %c0_42] : memref<2x128x128xf32, #tpu.memory_space<vmem>>, vector<1x128x128xf32>
        %57 = vector.shape_cast %56 : vector<1x128x128xf32> to vector<128x128xf32>
        %58 = vector.shape_cast %54 : vector<128x128xf32> to vector<1x128x128xf32>
        tpu.vector_store %arg13[%55, %c0_41, %c0_42], %58 {strides = array<i32>} : memref<2x128x128xf32, #tpu.memory_space<vmem>>, vector<1x128x128xf32>,
      } else {
      }
      %9 = arith.index_cast %arg2 : i32 to index
      %c0 = arith.constant 0 : index
      %c0_4 = arith.constant 0 : index
      %10 = vector.load %arg13[%9, %c0, %c0_4] : memref<2x128x128xf32, #tpu.memory_space<vmem>>, vector<1x128x128xf32>
      %11 = vector.shape_cast %10 : vector<1x128x128xf32> to vector<128x128xf32>
      %c0_5 = arith.constant 0 : index
      %c0_6 = arith.constant 0 : index
      %c0_7 = arith.constant 0 : index
      %12 = vector.load %arg3[%c0_5, %c0_6, %c0_7] : memref<1x128x128xbf16, #tpu.memory_space<vmem>>, vector<1x128x128xbf16>
      %13 = vector.shape_cast %12 : vector<1x128x128xbf16> to vector<128x128xbf16>
      %14 = arith.extf %13 : vector<128x128xbf16> to vector<128x128xf32>
      %cst = arith.constant dense<0.000000e+00> : vector<128x128xf32>
      %15 = tpu.matmul %14, %11, %cst {dimension_numbers = #tpu.dot_dimension_numbers<[1], [0], [0], [1], [0, 0, 1, 1], [], []>} : vector<128x128xf32>, vector<128x128xf32>, vector<128x128xf32> -> vector<128x128xf32>
      %16 = arith.addf %11, %15 : vector<128x128xf32>
      %c0_8 = arith.constant 0 : index
      %c0_9 = arith.constant 0 : index
      %c0_10 = arith.constant 0 : index
      %17 = vector.load %arg5[%c0_8, %c0_9, %c0_10] : memref<1x128x128xf32, #tpu.memory_space<vmem>>, vector<1x128x128xf32>
      %18 = vector.shape_cast %17 : vector<1x128x128xf32> to vector<128x128xf32>
      %cst_11 = arith.constant dense<0.000000e+00> : vector<128x128xf32>
      %19 = tpu.matmul %16, %18, %cst_11 {dimension_numbers = #tpu.dot_dimension_numbers<[1], [0], [0], [1], [0, 0, 1, 1], [], []>} : vector<128x128xf32>, vector<128x128xf32>, vector<128x128xf32> -> vector<128x128xf32>
      %c0_12 = arith.constant 0 : index
      %c0_13 = arith.constant 0 : index
      %c0_14 = arith.constant 0 : index
      %20 = vector.load %arg6[%c0_12, %c0_13, %c0_14] : memref<1x1x128xf32, #tpu.memory_space<vmem>>, vector<1x1x128xf32>
      %21 = vector.shape_cast %20 : vector<1x1x128xf32> to vector<1x128xf32>
      %22 = vector.broadcast %21 : vector<1x128xf32> to vector<128x128xf32>
      %23 = arith.addf %19, %22 : vector<128x128xf32>
      %cst_15 = arith.constant 0.000000e+00 : f32
      %24 = vector.broadcast %cst_15 : f32 to vector<128x128xf32>
      %25 = arith.maximumf %23, %24 : vector<128x128xf32>
      %c0_16 = arith.constant 0 : index
      %c0_17 = arith.constant 0 : index
      %c0_18 = arith.constant 0 : index
      %26 = vector.load %arg7[%c0_16, %c0_17, %c0_18] : memref<1x128x128xf32, #tpu.memory_space<vmem>>, vector<1x128x128xf32>
      %27 = vector.shape_cast %26 : vector<1x128x128xf32> to vector<128x128xf32>
      %cst_19 = arith.constant dense<0.000000e+00> : vector<128x128xf32>
      %28 = tpu.matmul %25, %27, %cst_19 {dimension_numbers = #tpu.dot_dimension_numbers<[1], [0], [0], [1], [0, 0, 1, 1], [], []>} : vector<128x128xf32>, vector<128x128xf32>, vector<128x128xf32> -> vector<128x128xf32>
      %c0_20 = arith.constant 0 : index
      %c0_21 = arith.constant 0 : index
      %c0_22 = arith.constant 0 : index
      %29 = vector.load %arg8[%c0_20, %c0_21, %c0_22] : memref<1x1x128xf32, #tpu.memory_space<vmem>>, vector<1x1x128xf32>
      %30 = vector.shape_cast %29 : vector<1x1x128xf32> to vector<1x128xf32>
      %31 = vector.broadcast %30 : vector<1x128xf32> to vector<128x128xf32>
      %32 = arith.addf %28, %31 : vector<128x128xf32>
      %cst_23 = arith.constant 0.000000e+00 : f32
      %33 = vector.broadcast %cst_23 : f32 to vector<128x128xf32>
      %34 = arith.maximumf %32, %33 : vector<128x128xf32>
      %35 = arith.index_cast %arg2 : i32 to index
      %c0_24 = arith.constant 0 : index
      %c0_25 = arith.constant 0 : index
      %36 = vector.load %arg14[%35, %c0_24, %c0_25] : memref<2x128x128xf32, #tpu.memory_space<vmem>>, vector<1x128x128xf32>
      %37 = vector.shape_cast %36 : vector<1x128x128xf32> to vector<128x128xf32>
      %38 = vector.shape_cast %34 : vector<128x128xf32> to vector<1x128x128xf32>
      tpu.vector_store %arg14[%35, %c0_24, %c0_25], %38 {strides = array<i32>} : memref<2x128x128xf32, #tpu.memory_space<vmem>>, vector<1x128x128xf32>,
      %c0_i32_26 = arith.constant 0 : i32
      %39 = arith.cmpi eq, %arg2, %c0_i32_26 : i32
      %40 = arith.extui %39 : i1 to i32
      %c0_i32_27 = arith.constant 0 : i32
      %41 = arith.cmpi ne, %40, %c0_i32_27 : i32
      scf.if %41 {
        %cst_38 = arith.constant 0.000000e+00 : f32
        %53 = vector.broadcast %cst_38 : f32 to vector<1x128xf32>
        %c0_39 = arith.constant 0 : index
        %c0_40 = arith.constant 0 : index
        %54 = vector.load %arg15[%c0_39, %c0_40] : memref<1x128xf32, #tpu.memory_space<vmem>>, vector<1x128xf32>
        tpu.vector_store %arg15[%c0_39, %c0_40], %53 {strides = array<i32>} : memref<1x128xf32, #tpu.memory_space<vmem>>, vector<1x128xf32>,
        %cst_41 = arith.constant 0.000000e+00 : f32
        %55 = vector.broadcast %cst_41 : f32 to vector<1x128xf32>
        %c0_42 = arith.constant 0 : index
        %c0_43 = arith.constant 0 : index
        %56 = vector.load %arg16[%c0_42, %c0_43] : memref<1x128xf32, #tpu.memory_space<vmem>>, vector<1x128xf32>
        tpu.vector_store %arg16[%c0_42, %c0_43], %55 {strides = array<i32>} : memref<1x128xf32, #tpu.memory_space<vmem>>, vector<1x128xf32>,
      } else {
      }
      %c0_28 = arith.constant 0 : index
      %c0_29 = arith.constant 0 : index
      %42 = vector.load %arg15[%c0_28, %c0_29] : memref<1x128xf32, #tpu.memory_space<vmem>>, vector<1x128xf32>
      %cst_30 = arith.constant dense<0.000000e+00> : vector<128xf32>
      %43 = vector.multi_reduction <add>, %34, %cst_30 [0] : vector<128x128xf32> to vector<128xf32>
      %44 = vector.shape_cast %43 : vector<128xf32> to vector<1x128xf32>
      %45 = arith.addf %42, %44 : vector<1x128xf32>
      %c0_31 = arith.constant 0 : index
      %c0_32 = arith.constant 0 : index
      %46 = vector.load %arg15[%c0_31, %c0_32] : memref<1x128xf32, #tpu.memory_space<vmem>>, vector<1x128xf32>
      tpu.vector_store %arg15[%c0_31, %c0_32], %45 {strides = array<i32>} : memref<1x128xf32, #tpu.memory_space<vmem>>, vector<1x128xf32>,
      %c0_33 = arith.constant 0 : index
      %c0_34 = arith.constant 0 : index
      %47 = vector.load %arg16[%c0_33, %c0_34] : memref<1x128xf32, #tpu.memory_space<vmem>>, vector<1x128xf32>
      %48 = arith.mulf %34, %34 : vector<128x128xf32>
      %cst_35 = arith.constant dense<0.000000e+00> : vector<128xf32>
      %49 = vector.multi_reduction <add>, %48, %cst_35 [0] : vector<128x128xf32> to vector<128xf32>
      %50 = vector.shape_cast %49 : vector<128xf32> to vector<1x128xf32>
      %51 = arith.addf %47, %50 : vector<1x128xf32>
      %c0_36 = arith.constant 0 : index
      %c0_37 = arith.constant 0 : index
      %52 = vector.load %arg16[%c0_36, %c0_37] : memref<1x128xf32, #tpu.memory_space<vmem>>, vector<1x128xf32>
      tpu.vector_store %arg16[%c0_36, %c0_37], %51 {strides = array<i32>} : memref<1x128xf32, #tpu.memory_space<vmem>>, vector<1x128xf32>,
    } else {
    }
    %c1_i32 = arith.constant 1 : i32
    %3 = arith.cmpi eq, %arg1, %c1_i32 : i32
    %4 = arith.extui %3 : i1 to i32
    %c0_i32_1 = arith.constant 0 : i32
    %5 = arith.cmpi ne, %4, %c0_i32_1 : i32
    scf.if %5 {
      %c0 = arith.constant 0 : index
      %c0_2 = arith.constant 0 : index
      %6 = vector.load %arg15[%c0, %c0_2] : memref<1x128xf32, #tpu.memory_space<vmem>>, vector<1x128xf32>
      %cst = arith.constant 3.906250e-03 : f32
      %7 = vector.broadcast %cst : f32 to vector<1x128xf32>
      %8 = arith.mulf %6, %7 : vector<1x128xf32>
      %c0_3 = arith.constant 0 : index
      %c0_4 = arith.constant 0 : index
      %9 = vector.load %arg16[%c0_3, %c0_4] : memref<1x128xf32, #tpu.memory_space<vmem>>, vector<1x128xf32>
      %cst_5 = arith.constant 3.906250e-03 : f32
      %10 = vector.broadcast %cst_5 : f32 to vector<1x128xf32>
      %11 = arith.mulf %9, %10 : vector<1x128xf32>
      %12 = arith.mulf %8, %8 : vector<1x128xf32>
      %13 = arith.subf %11, %12 : vector<1x128xf32>
      %cst_6 = arith.constant 0.000000e+00 : f32
      %14 = vector.broadcast %cst_6 : f32 to vector<1x128xf32>
      %15 = arith.maximumf %13, %14 : vector<1x128xf32>
      %cst_7 = arith.constant 9.99999974E-6 : f32
      %16 = vector.broadcast %cst_7 : f32 to vector<1x128xf32>
      %17 = arith.addf %15, %16 : vector<1x128xf32>
      %18 = math.rsqrt %17 : vector<1x128xf32>
      %c0_8 = arith.constant 0 : index
      %c0_9 = arith.constant 0 : index
      %c0_10 = arith.constant 0 : index
      %19 = vector.load %arg9[%c0_8, %c0_9, %c0_10] : memref<1x1x128xf32, #tpu.memory_space<vmem>>, vector<1x1x128xf32>
      %20 = vector.shape_cast %19 : vector<1x1x128xf32> to vector<1x128xf32>
      %21 = arith.mulf %18, %20 : vector<1x128xf32>
      %c0_11 = arith.constant 0 : index
      %c0_12 = arith.constant 0 : index
      %c0_13 = arith.constant 0 : index
      %22 = vector.load %arg10[%c0_11, %c0_12, %c0_13] : memref<1x1x128xf32, #tpu.memory_space<vmem>>, vector<1x1x128xf32>
      %23 = vector.shape_cast %22 : vector<1x1x128xf32> to vector<1x128xf32>
      %24 = arith.mulf %8, %21 : vector<1x128xf32>
      %25 = arith.subf %23, %24 : vector<1x128xf32>
      %26 = arith.index_cast %arg2 : i32 to index
      %c0_14 = arith.constant 0 : index
      %c0_15 = arith.constant 0 : index
      %27 = vector.load %arg14[%26, %c0_14, %c0_15] : memref<2x128x128xf32, #tpu.memory_space<vmem>>, vector<1x128x128xf32>
      %28 = vector.shape_cast %27 : vector<1x128x128xf32> to vector<128x128xf32>
      %29 = vector.broadcast %21 : vector<1x128xf32> to vector<128x128xf32>
      %30 = arith.mulf %28, %29 : vector<128x128xf32>
      %31 = vector.broadcast %25 : vector<1x128xf32> to vector<128x128xf32>
      %32 = arith.addf %30, %31 : vector<128x128xf32>
      %c0_16 = arith.constant 0 : index
      %c0_17 = arith.constant 0 : index
      %33 = vector.load %arg11[%c0_16, %c0_17] : memref<128x128xf32, #tpu.memory_space<vmem>>, vector<128x128xf32>
      tpu.vector_store %arg11[%c0_16, %c0_17], %32 {strides = array<i32>} : memref<128x128xf32, #tpu.memory_space<vmem>>, vector<128x128xf32>,
      %34 = arith.index_cast %arg2 : i32 to index
      %c0_18 = arith.constant 0 : index
      %c0_19 = arith.constant 0 : index
      %35 = vector.load %arg13[%34, %c0_18, %c0_19] : memref<2x128x128xf32, #tpu.memory_space<vmem>>, vector<1x128x128xf32>
      %36 = vector.shape_cast %35 : vector<1x128x128xf32> to vector<128x128xf32>
      %37 = vector.shape_cast %32 : vector<128x128xf32> to vector<1x128x128xf32>
      tpu.vector_store %arg13[%34, %c0_18, %c0_19], %37 {strides = array<i32>} : memref<2x128x128xf32, #tpu.memory_space<vmem>>, vector<1x128x128xf32>,
      %cst_20 = arith.constant dense<0.000000e+00> : vector<128xf32>
      %38 = vector.multi_reduction <add>, %32, %cst_20 [0] : vector<128x128xf32> to vector<128xf32>
      %39 = vector.shape_cast %38 : vector<128xf32> to vector<1x128xf32>
      %40 = tpu.iota {dimensions = array<i32: 0>} : vector<2x1xi32>
      %c0_i32_21 = arith.constant 0 : i32
      %41 = arith.cmpi eq, %arg2, %c0_i32_21 : i32
      %42 = arith.extui %41 : i1 to i32
      %c0_i32_22 = arith.constant 0 : i32
      %43 = arith.cmpi ne, %42, %c0_i32_22 : i32
      scf.if %43 {
        %cst_28 = arith.constant 0.000000e+00 : f32
        %55 = vector.broadcast %cst_28 : f32 to vector<2x128xf32>
        %c0_29 = arith.constant 0 : index
        %c0_30 = arith.constant 0 : index
        %56 = vector.load %arg12[%c0_29, %c0_30] : memref<2x128xf32, #tpu.memory_space<vmem>>, vector<2x128xf32>
        tpu.vector_store %arg12[%c0_29, %c0_30], %55 {strides = array<i32>} : memref<2x128xf32, #tpu.memory_space<vmem>>, vector<2x128xf32>,
      } else {
      }
      %c0_23 = arith.constant 0 : index
      %c0_24 = arith.constant 0 : index
      %44 = vector.load %arg12[%c0_23, %c0_24] : memref<2x128xf32, #tpu.memory_space<vmem>>, vector<2x128xf32>
      %45 = vector.broadcast %arg2 : i32 to vector<2x1xi32>
      %46 = arith.cmpi eq, %40, %45 : vector<2x1xi32>
      %cst_25 = arith.constant 0.000000e+00 : f32
      %47 = vector.shape_cast %46 : vector<2x1xi1> to vector<2x1xi1>
      %48 = vector.broadcast %47 : vector<2x1xi1> to vector<2x128xi1>
      %49 = vector.shape_cast %39 : vector<1x128xf32> to vector<1x128xf32>
      %50 = vector.broadcast %49 : vector<1x128xf32> to vector<2x128xf32>
      %51 = vector.broadcast %cst_25 : f32 to vector<2x128xf32>
      %52 = arith.select %48, %50, %51 : vector<2x128xi1>, vector<2x128xf32>
      %53 = arith.addf %44, %52 : vector<2x128xf32>
      %c0_26 = arith.constant 0 : index
      %c0_27 = arith.constant 0 : index
      %54 = vector.load %arg12[%c0_26, %c0_27] : memref<2x128xf32, #tpu.memory_space<vmem>>, vector<2x128xf32>
      tpu.vector_store %arg12[%c0_26, %c0_27], %53 {strides = array<i32>} : memref<2x128xf32, #tpu.memory_space<vmem>>, vector<2x128xf32>,
    } else {
    }
    return
  }
  func.func @transform_0(%arg0: i32, %arg1: i32, %arg2: i32) -> (i32, i32, i32) {
    %c0_i32 = arith.constant 0 : i32
    %0 = arith.cmpi eq, %arg1, %c0_i32 : i32
    %c1_i32 = arith.constant 1 : i32
    %1 = arith.select %0, %arg2, %c1_i32 : i32
    %c0_i32_0 = arith.constant 0 : i32
    %c0_i32_1 = arith.constant 0 : i32
    %c0_i32_2 = arith.constant 0 : i32
    return %1, %c0_i32_0, %c0_i32_1 : i32, i32, i32
  }
  func.func @transform_1(%arg0: i32, %arg1: i32, %arg2: i32) -> (i32, i32, i32) {
    %c0_i32 = arith.constant 0 : i32
    %0 = arith.cmpi eq, %arg0, %c0_i32 : i32
    %c0_i32_0 = arith.constant 0 : i32
    %1 = arith.cmpi eq, %arg1, %c0_i32_0 : i32
    %2 = arith.andi %0, %1 : i1
    %c0_i32_1 = arith.constant 0 : i32
    %3 = arith.select %2, %arg2, %c0_i32_1 : i32
    %c0_i32_2 = arith.constant 0 : i32
    %c0_i32_3 = arith.constant 0 : i32
    %c0_i32_4 = arith.constant 0 : i32
    return %3, %c0_i32_2, %c0_i32_3 : i32, i32, i32
  }
  func.func @transform_2(%arg0: i32, %arg1: i32, %arg2: i32) -> (i32, i32, i32) {
    %c0_i32 = arith.constant 0 : i32
    %c0_i32_0 = arith.constant 0 : i32
    %c0_i32_1 = arith.constant 0 : i32
    return %arg0, %c0_i32, %c0_i32_0 : i32, i32, i32
  }
  func.func @transform_3(%arg0: i32, %arg1: i32, %arg2: i32) -> (i32, i32, i32) {
    %c0_i32 = arith.constant 0 : i32
    %c0_i32_0 = arith.constant 0 : i32
    %c0_i32_1 = arith.constant 0 : i32
    return %arg0, %c0_i32, %c0_i32_0 : i32, i32, i32
  }
  func.func @transform_4(%arg0: i32, %arg1: i32, %arg2: i32) -> (i32, i32, i32) {
    %c0_i32 = arith.constant 0 : i32
    %c0_i32_0 = arith.constant 0 : i32
    %c0_i32_1 = arith.constant 0 : i32
    return %arg0, %c0_i32, %c0_i32_0 : i32, i32, i32
  }
  func.func @transform_5(%arg0: i32, %arg1: i32, %arg2: i32) -> (i32, i32, i32) {
    %c0_i32 = arith.constant 0 : i32
    %c0_i32_0 = arith.constant 0 : i32
    %c0_i32_1 = arith.constant 0 : i32
    return %arg0, %c0_i32, %c0_i32_0 : i32, i32, i32
  }
  func.func @transform_6(%arg0: i32, %arg1: i32, %arg2: i32) -> (i32, i32, i32) {
    %c0_i32 = arith.constant 0 : i32
    %c0_i32_0 = arith.constant 0 : i32
    %c0_i32_1 = arith.constant 0 : i32
    return %arg0, %c0_i32, %c0_i32_0 : i32, i32, i32
  }
  func.func @transform_7(%arg0: i32, %arg1: i32, %arg2: i32) -> (i32, i32, i32) {
    %c0_i32 = arith.constant 0 : i32
    %c0_i32_0 = arith.constant 0 : i32
    %c0_i32_1 = arith.constant 0 : i32
    return %arg0, %c0_i32, %c0_i32_0 : i32, i32, i32
  }
  func.func @transform_8(%arg0: i32, %arg1: i32, %arg2: i32) -> (i32, i32) {
    %0 = arith.muli %arg2, %arg1 : i32
    %c0_i32 = arith.constant 0 : i32
    return %0, %arg0 : i32, i32
  }
  func.func @transform_9(%arg0: i32, %arg1: i32, %arg2: i32) -> (i32, i32) {
    %c0_i32 = arith.constant 0 : i32
    %c0_i32_0 = arith.constant 0 : i32
    return %c0_i32, %arg0 : i32, i32
  }
}

</mosaic_0001>

<bundles_post_ra>
// kernel: gin_forward.1
= control target key start
LH: loop header
LB: loop body
LE: loop exit
PB: predicated region body
PF: predicated region fallthrough
CT: control target
= control target key end

     0   :  { %s2470_s0 = inlined_call_operand.vmem [shape: bf16[2,128,128], index: 0, kind: input, shape index: {}]   ;;  %s2471_s1 = inlined_call_operand.vmem [shape: f32[2,128,128], index: 1, kind: input, shape index: {}]   ;;  %s2472_s2 = inlined_call_operand.vmem [shape: f32[2,128,128], index: 2, kind: input, shape index: {}]   ;;  %s2473_s3 = inlined_call_operand.vmem [shape: f32[2,1,128], index: 3, kind: input, shape index: {}]   ;;  %s2474_s4 = inlined_call_operand.vmem [shape: f32[2,128,128], index: 4, kind: input, shape index: {}]   ;;  %s2475_s5 = inlined_call_operand.vmem [shape: f32[2,1,128], index: 5, kind: input, shape index: {}]   ;;  %s2476_s6 = inlined_call_operand.vmem [shape: f32[2,1,128], index: 6, kind: input, shape index: {}]   ;;  %s2477_s7 = inlined_call_operand.vmem [shape: f32[2,1,128], index: 7, kind: input, shape index: {}]   ;;  %s2478_s8 = inlined_call_operand.hbm [shape: f32[256,256], index: 8, kind: output, shape index: {0}]   ;;  %s2479_s9 = inlined_call_operand.hbm [shape: f32[2,256], index: 9, kind: output, shape index: {1}]  }
   0x1   :  { %2504 = sst [smem:[#allocation31_spill]] %s2470_s0 }
   0x2   :  { %2505 = sst [smem:[#allocation32_spill]] %s2471_s1 }
   0x3   :  { %2506 = sst [smem:[#allocation33_spill]] %s2472_s2 }
   0x4   :  { %2507 = sst [smem:[#allocation34_spill]] %s2478_s8 }
   0x5   :  { %2508 = sst [smem:[#allocation35_spill]] %s2479_s9 }
   0x6   :  { %15 = vsyncpa [#allocation7], 0 }
   0x7   :  { %17 = vsyncpa [#allocation7 + $0x1], 0 }
   0x8   :  { %18 = vsyncpa [#allocation9], 0 }
   0x9   :  { %20 = vsyncpa [#allocation9 + $0x1], 0  ;;  %s1854_s30 = smov 0   ;;  %s1856_s10 = smov 0  }
   0xa   :  { %s1858_s11 = smov 0   ;;  %s1860_s12 = smov 0  }
   0xb   :  { %s1862_s13 = smov 0   ;;  %s1864_s14 = smov 0  }
   0xc   :  { %s1866_s15 = smov 0   ;;  %s1868_s16 = smov 0  }
   0xd   :  { %s1870_s17 = smov 0   ;;  %s1872_s18 = smov 0  }
   0xe   :  { %s1874_s19 = smov 0   ;;  %s1876_s20 = smov 0  }
   0xf   :  { %s1878_s21 = smov 0  }
  0x10 LB: > { %2509 = sst [smem:[#allocation12_spill]] %s1749_s30  ;;  %s1380_s22 = sadd.s32 4294967295, %s1797_s21   ;;  %s1797_s21 = sphi %s1878_s21, %s26_s21   ;;  %s1793_s20 = sphi %s1876_s20, %s2563_s20   ;;  %s1789_s19 = sphi %s1874_s19, %s2562_s19   ;;  %s1785_s18 = sphi %s1872_s18, %s2561_s18   ;;  %s1781_s17 = sphi %s1870_s17, %s2560_s17   ;;  %s1777_s16 = sphi %s1868_s16, %s2559_s16   ;;  %s1773_s15 = sphi %s1866_s15, %s2558_s15   ;;  %s1769_s14 = sphi %s1864_s14, %s2557_s14   ;;  %s1765_s13 = sphi %s1862_s13, %s2556_s13   ;;  %s1761_s12 = sphi %s1860_s12, %s2555_s12   ;;  %s1757_s11 = sphi %s1858_s11, %s2554_s11   ;;  %s1753_s10 = sphi %s1856_s10, %s2553_s10   ;;  %s1749_s30 = sphi %s1854_s30, %s2552_s30  }
  0x11   : > { %2510 = sst [smem:[#allocation13_spill]] %s1753_s10  ;;  %s1381_s23 = sadd.s32 4294967294, %s1797_s21  }
  0x12   : > { %2511 = sst [smem:[#allocation14_spill]] %s1757_s11  ;;  %s38_s24 = sadd.s32 1, %s1785_s18 }
  0x13   : > { %2512 = sst [smem:[#allocation15_spill]] %s1761_s12  ;;  %s41_s25 = sadd.s32 1, %s1789_s19 }
  0x14   : > { %2513 = sst [smem:[#allocation16_spill]] %s1765_s13  ;;  %p39_p0 = scmp.ge.s32.totalorder %s38_s24, 2 }
  0x15   : > { %2514 = sst [smem:[#allocation17_spill]] %s1769_s14  ;;  %s45_s26 = sadd.s32 1, %s1793_s20 }
  0x16   : > { %2515 = sst [smem:[#allocation18_spill]] %s1785_s18  ;;  %s271_s27 = smul.u32 %s1785_s18, %s1789_s19 }
  0x17   : > { %2516 = sst [smem:[#allocation19_spill]] %s1789_s19  ;;  %s278_s28 = sadd.s32 1, %s1769_s14 }
  0x18   : > { %2517 = sst [smem:[#allocation20_spill]] %s1793_s20  ;;  %s2565_s24 = smov (%p39_p0, %s38_s24), 0 }
  0x19   : > { %2518 = sst [smem:[#allocation21_spill]] %s1797_s21  ;;  %s2567_s25 = smov (!%p39_p0, %s41_s25), %s1789_s19 }
  0x1a   : > { %2519 = sst [smem:[#allocation22_spill]] %s2565_s24  ;;  %p288_p1 = scmp.ne.s32.totalorder %s1769_s14, %s1765_s13 }
  0x1b   : > { %p1932_p2 = scmp.eq.s32.totalorder %s1380_s22, 7  ;;  %p43_p3 = scmp.ge.s32.totalorder %s2567_s25, 2 }
  0x1c   : > { %p294_p4 = scmp.ne.s32.totalorder %s1765_s13, %s1761_s12  ;;  %p1944_p6 = scmp.eq.s32.totalorder %s1381_s23, 7 }
  0x1d   : > { %p1940_p5 = por %p1932_p2, %p288_p1  ;;  %s2569_s25 = smov (%p43_p3, %s2567_s25), 0 }
  0x1e   : > { %2524 = sst [smem:[#allocation24_spill]] %s2569_s25  ;;  %s2571_s26 = smov (!%p43_p3, %s45_s26), %s1793_s20 }
  0x1f   : > { %s2521_s18 = scalar_select %p1940_p5, 1, 0 }
  0x20   : > { %s272_s22 = smul.u32 %s2569_s25, %s2565_s24  ;;  %p1955_p7 = por %p1944_p6, %p294_p4 }
  0x21   : > { %2522 = sst [smem:[#allocation23_spill]] %s2521_s18  ;;  %p47_p8 = scmp.ge.s32.totalorder %s2571_s26, 2 }
  0x22   : > { %s2525_s12 = scalar_select %p1955_p7, 1, 0 }
  0x23   : > { %s304_s23 = sadd.s32 1, %s1757_s11  ;;  %s273_s9 = ssub.s32 %s271_s27, %s272_s22 }
  0x24   : > { %2526 = sst [smem:[#allocation25_spill]] %s2525_s12  ;;  %p314_p9 = scmp.ne.s32.totalorder %s1757_s11, %s1753_s10 }
  0x25   : > { %s2573_s26 = smov (%p47_p8, %s2571_s26), 0  ;;  %p320_p11 = scmp.ne.s32.totalorder %s1753_s10, %s1749_s30 }
  0x26   : > { %2527 = sst [smem:[#allocation26_spill]] %s2573_s26  ;;  %p1966_p10 = por %p314_p9, %p1932_p2 }
  0x27   : > { %s274_s25 = ssub.s32 %s1793_s20, %s2573_s26  ;;  %p1386_p12 = scmp.ge.s32.totalorder %s1797_s21, 1 }
  0x28   : > { %s2528_s8 = scalar_select %p1966_p10, 1, 0 }
  0x29   : > { %s275_s24 = sor.u32 %s274_s25, %s273_s9  ;;  %p302_p13 = scmp.eq.s32.totalorder %s274_s25, 0 }
  0x2a   : > { %2529 = sst [smem:[#allocation27_spill]] %s2528_s8  ;;  %p276_p0 = scmp.eq.s32.totalorder %s275_s24, 0 }
  0x2b   : > { %p1977_p1 = por %p320_p11, %p1944_p6  ;;  %p409_p3 = scmp.lt.s32.totalorder %s1797_s21, 9 }
  0x2c   : > { %s1982_s27 = scalar_select %p302_p13, %s1757_s11, %s304_s23  }
  0x2d   : > { %s2530_s12 = scalar_select %p1977_p1, 1, 0 }
  0x2e   : > { %2532 = sst [smem:[#allocation29_spill]] %s1982_s27  ;;  %p410_p2 = pnand %p1386_p12, %p409_p3 }
  0x2f   : > { %2531 = sst [smem:[#allocation28_spill]] %s2530_s12  ;;  %s2492_s9 = sand.u32 (!%p410_p2), 1, %s1765_s13  }
  0x30   : > { %s1985_s22 = scalar_select %p276_p0, %s1769_s14, %s278_s28  }
  0x31   : > { %413 = sbr.rel (%p410_p2) target bundleno = 796 (0x31c), region = 52  ;;  %s2491_s19 = sand.u32 (!%p410_p2), 1, %s1753_s10  }
  0x32   : > { %2533 = sst [smem:[#allocation30_spill]] %s1985_s22  ;;  %s1387_s24 = sshll.u32 (!%p410_p2), %s2492_s9, 7 }
  0x33   : > { %s1388_s25 = sshll.u32 (!%p410_p2), %s2491_s19, 1  ;;  %p484_p4 = scmp.eq.s32.totalorder (!%p410_p2), %s1777_s16, 0 }
  0x34   : > { %p493_p6 = scmp.eq.s32.totalorder (!%p410_p2), %s1781_s17, 0  ;;  %p508_p12 = scmp.lt.s32.totalorder (!%p410_p2), %s1781_s17, 1 }
  0x35   : > { %s2534_s0 = sld [smem:[#allocation31_spill]] (!%p410_p2)  ;;  %s2039_s13 = scalar_lea.vmem (!%p410_p2), [#allocation6], %s1387_s24 }
  0x36   : > { %s485_s28 = scalar_select %p484_p4, %s1773_s15, 1 }
  0x37   : > { %p495_p8 = pnand %p493_p6, %p484_p4  ;;  %s2535_s1 = sld [smem:[#allocation32_spill]] }
  0x38   : > { %p486_p9 = scmp.lt.s32.totalorder %s485_s28, 1  ;;  %s2536_s2 = sld [smem:[#allocation33_spill]] }
  0x39   : > { %s1391_s29 = scalar_select %p495_p8, 0, %s1773_s15 }
  0x3a   : > { %s2575_s28 = smov (!%p486_p9, %s485_s28), 1  ;;  %s2041_s26 = scalar_lea.vmem [#allocation8], %s1388_s25 }
  0x3b   : > { %p498_p11 = scmp.lt.s32.totalorder %s1391_s29, 1  ;;  %s1414_s23 = sshll.u32 %s2575_s28, 6 }
  0x3c   : > { %s2002_s22 = scalar_lea.vmem %s2534_s0, %s1414_s23  ;;  %p1398_p13 = scmp.ne.s32.totalorder %s1777_s16, 0 }
  0x3d   : > { %s2577_s29 = smov (!%p498_p11, %s1391_s29), 1  ;;  %p1399_p0 = scmp.ne.s32.totalorder (!%p1398_p13), %s1781_s17, 0 }
  0x3e   : > { %s2005_s14 = scalar_select %p508_p12, %s1781_s17, 1 }
  0x3f   : > { %s1415_s19 = sshll.u32 %s2577_s29, 7  ;;  %535 = sbr.rel (%p1398_p13) target bundleno = 661 (0x295), region = 56 }
  0x40   : > { %s2010_s11 = scalar_lea.vmem %s2535_s1, %s1415_s19  ;;  %s1416_s28 = sshll.u32 %s2005_s14, 7 }
  0x41   : > { %s2016_s20 = scalar_lea.vmem %s2536_s2, %s1416_s28  ;;  %s515_s0 = scalar_lea.vmem %s2473_s3, %s2005_s14 }
  0x42   : > { %s2025_s10 = scalar_lea.vmem %s2474_s4, %s1416_s28  ;;  %s523_s27 = scalar_lea.vmem %s2475_s5, %s2005_s14 }
  0x43   : > { %s526_s1 = scalar_lea.vmem %s2476_s6, %s2005_s14  ;;  %s529_s2 = scalar_lea.vmem %s2477_s7, %s2005_s14 }
  0x44   : > { %539 = sbr.rel (%p1399_p0) target bundleno = 90 (0x5a), region = 60  ;;  %s1400_s8 = sshll.u32 (!%p1399_p0), %s1773_s15, 7 }
  0x45   : > { %s557_s18 = scalar_lea.vmem (!%p1399_p0), [#allocation2], %s1400_s8 }
  0x49   : > { %v540_v0 = vld [vmem:[%s2010_s11] sm:$0xff]  ;;  %v541_v1 = vld [vmem:[%s2010_s11 + $0x8] sm:$0xff]  ;;  %v542_v2 = vld [vmem:[%s2010_s11 + $0x10] sm:$0xff] }
  0x4a   : > { %558 = vst [vmem:[%s557_s18] sm:$0xff] %v540_v0  ;;  %v543_v3 = vld [vmem:[%s2010_s11 + $0x18] sm:$0xff]  ;;  %v544_v4 = vld [vmem:[%s2010_s11 + $0x20] sm:$0xff]  ;;  %v545_v5 = vld [vmem:[%s2010_s11 + $0x28] sm:$0xff] }
  0x4b   : > { %559 = vst [vmem:[%s557_s18 + $0x8] sm:$0xff] %v541_v1  ;;  %v546_v6 = vld [vmem:[%s2010_s11 + $0x30] sm:$0xff]  ;;  %v547_v7 = vld [vmem:[%s2010_s11 + $0x38] sm:$0xff]  ;;  %v548_v8 = vld [vmem:[%s2010_s11 + $0x40] sm:$0xff] }
  0x4c   : > { %560 = vst [vmem:[%s557_s18 + $0x10] sm:$0xff] %v542_v2  ;;  %v549_v9 = vld [vmem:[%s2010_s11 + $0x48] sm:$0xff]  ;;  %v550_v10 = vld [vmem:[%s2010_s11 + $0x50] sm:$0xff]  ;;  %v551_v11 = vld [vmem:[%s2010_s11 + $0x58] sm:$0xff] }
  0x4d   : > { %561 = vst [vmem:[%s557_s18 + $0x18] sm:$0xff] %v543_v3  ;;  %v552_v12 = vld [vmem:[%s2010_s11 + $0x60] sm:$0xff]  ;;  %v553_v13 = vld [vmem:[%s2010_s11 + $0x68] sm:$0xff]  ;;  %v554_v14 = vld [vmem:[%s2010_s11 + $0x70] sm:$0xff] }
  0x4e   : > { %562 = vst [vmem:[%s557_s18 + $0x20] sm:$0xff] %v544_v4  ;;  %v555_v15 = vld [vmem:[%s2010_s11 + $0x78] sm:$0xff] }
  0x4f   : > { %563 = vst [vmem:[%s557_s18 + $0x28] sm:$0xff] %v545_v5 }
  0x50   : > { %564 = vst [vmem:[%s557_s18 + $0x30] sm:$0xff] %v546_v6 }
  0x51   : > { %565 = vst [vmem:[%s557_s18 + $0x38] sm:$0xff] %v547_v7 }
  0x52   : > { %566 = vst [vmem:[%s557_s18 + $0x40] sm:$0xff] %v548_v8 }
  0x53   : > { %567 = vst [vmem:[%s557_s18 + $0x48] sm:$0xff] %v549_v9 }
  0x54   : > { %568 = vst [vmem:[%s557_s18 + $0x50] sm:$0xff] %v550_v10 }
  0x55   : > { %569 = vst [vmem:[%s557_s18 + $0x58] sm:$0xff] %v551_v11 }
  0x56   : > { %570 = vst [vmem:[%s557_s18 + $0x60] sm:$0xff] %v552_v12 }
  0x57   : > { %571 = vst [vmem:[%s557_s18 + $0x68] sm:$0xff] %v553_v13 }
  0x58   : > { %572 = vst [vmem:[%s557_s18 + $0x70] sm:$0xff] %v554_v14 }
  0x59   : > { %573 = vst [vmem:[%s557_s18 + $0x78] sm:$0xff] %v555_v15 }
  0x5a PF: > { %s1401_s21 = sshll.u32 %s1773_s15, 7  ;;  %v1420_v30 = vld [vmem:[%s2002_s22] sm:$0xff]   ;;  %v1451_v35 = vld [vmem:[%s2002_s22 + $0x8] sm:$0xff]   ;;  %v1456_v37 = vld [vmem:[%s2002_s22 + $0x30] sm:$0xff]   ;;  %p1402_p3 = scmp.ne.s32.totalorder %s1773_s15, 0 }
  0x5b   : > { %s2065_s24 = scalar_lea.vmem [#allocation2], %s1401_s21  ;;  %v1421_v33 = vunpack.c.l.bf16 %v1420_v30  ;;  %v1422_v34 = vunpack.c.h.bf16 %v1420_v30  ;;  %v1425_v36 = vunpack.c.l.bf16 %v1451_v35  ;;  %v1445_v38 = vunpack.c.l.bf16 %v1456_v37  ;;  %v1452_v41 = vld [vmem:[%s2002_s22 + $0x10] sm:$0xff]   ;;  %v1457_v43 = vld [vmem:[%s2002_s22 + $0x38] sm:$0xff]   ;;  %v1454_v52 = vld [vmem:[%s2002_s22 + $0x20] sm:$0xff]   ;;  %s2220_s25 = scalar_lea.vmem [#allocation3], %s1401_s21 }
  0x5c   : > { %v1426_v39 = vunpack.c.h.bf16 %v1451_v35  ;;  %v1446_v40 = vunpack.c.h.bf16 %v1456_v37  ;;  %v1429_v42 = vunpack.c.l.bf16 %v1452_v41  ;;  %v1449_v44 = vunpack.c.l.bf16 %v1457_v43  ;;  %v1453_v47 = vld [vmem:[%s2002_s22 + $0x18] sm:$0xff]   ;;  %v719_v51 = vld [vmem:[%s2016_s20 + $0x70] sm:$0xff]  ;;  %v718_v53 = vld [vmem:[%s2016_s20 + $0x68] sm:$0xff] }
  0x5d   : > { %v1430_v45 = vunpack.c.h.bf16 %v1452_v41  ;;  %v1450_v46 = vunpack.c.h.bf16 %v1457_v43  ;;  %v1433_v48 = vunpack.c.l.bf16 %v1453_v47  ;;  %v1434_v49 = vunpack.c.h.bf16 %v1453_v47  ;;  %v720_v50 = vld [vmem:[%s2016_s20 + $0x78] sm:$0xff]  ;;  %v717_v55 = vld [vmem:[%s2016_s20 + $0x60] sm:$0xff]  ;;  %v715_v57 = vld [vmem:[%s2016_s20 + $0x50] sm:$0xff] }
  0x5e   : > { %725 = vmatpush.msra.mxu1 %v720_v50  ;;  %v1437_v54 = vunpack.c.l.bf16 %v1454_v52  ;;  %v716_v56 = vld [vmem:[%s2016_s20 + $0x58] sm:$0xff]  ;;  %v714_v58 = vld [vmem:[%s2016_s20 + $0x48] sm:$0xff]  ;;  %v1438_v59 = vunpack.c.h.bf16 %v1454_v52  ;;  %v713_v60 = vld [vmem:[%s2016_s20 + $0x40] sm:$0xff] }
  0x5f   : > { %v712_v61 = vld [vmem:[%s2016_s20 + $0x38] sm:$0xff]  ;;  %v711_v62 = vld [vmem:[%s2016_s20 + $0x30] sm:$0xff]  ;;  %v1455_v63 = vld [vmem:[%s2002_s22 + $0x28] sm:$0xff]  }
  0x60   : > { %v2068_v16 = vld [vmem:[%s2065_s24 + $0x78] sm:$0xff]  ;;  %v2071_v17 = vld [vmem:[%s2065_s24 + $0x70] sm:$0xff]  ;;  %v2076_v18 = vld [vmem:[%s2065_s24 + $0x68] sm:$0xff]  ;;  %726 = vmatpush.msra.mxu1 %v719_v51  ;;  %v1441_v1 = vunpack.c.l.bf16 %v1455_v63  ;;  %v1442_v5 = vunpack.c.h.bf16 %v1455_v63 }
  0x61   : > { %624 = vmatpush.msra.mxu0 %v2068_v16  ;;  %1458 = vmatpush.msra.mxu3 %v2068_v16  ;;  %v2081_v19 = vld [vmem:[%s2065_s24 + $0x60] sm:$0xff]  ;;  %v2086_v20 = vld [vmem:[%s2065_s24 + $0x58] sm:$0xff]  ;;  %v2091_v21 = vld [vmem:[%s2065_s24 + $0x50] sm:$0xff] }
  0x62   : > { %v2096_v22 = vld [vmem:[%s2065_s24 + $0x48] sm:$0xff]  ;;  %v2101_v23 = vld [vmem:[%s2065_s24 + $0x40] sm:$0xff]  ;;  %v2106_v24 = vld [vmem:[%s2065_s24 + $0x38] sm:$0xff]  ;;  %727 = vmatpush.msra.mxu1 %v718_v53 }
  0x63   : > { %625 = vmatpush.msra.mxu0 %v2071_v17  ;;  %1459 = vmatpush.msra.mxu3 %v2071_v17  ;;  %v2111_v25 = vld [vmem:[%s2065_s24 + $0x30] sm:$0xff]  ;;  %v2116_v26 = vld [vmem:[%s2065_s24 + $0x28] sm:$0xff]  ;;  %v2121_v27 = vld [vmem:[%s2065_s24 + $0x20] sm:$0xff] }
  0x64   : > { %v2126_v28 = vld [vmem:[%s2065_s24 + $0x18] sm:$0xff]  ;;  %v2131_v29 = vld [vmem:[%s2065_s24 + $0x10] sm:$0xff]  ;;  %v2137_v31 = vld [vmem:[%s2065_s24 + $0x8] sm:$0xff]  ;;  %728 = vmatpush.msra.mxu1 %v717_v55 }
  0x65   : > { %626 = vmatpush.msra.mxu0 %v2076_v18  ;;  %1460 = vmatpush.msra.mxu3 %v2076_v18  ;;  %v2142_v32 = vld [vmem:[%s2065_s24] sm:$0xff]  ;;  %v710_v0 = vld [vmem:[%s2016_s20 + $0x28] sm:$0xff]  ;;  %v708_v3 = vld [vmem:[%s2016_s20 + $0x18] sm:$0xff] }
  0x66   : > { %729 = vmatpush.msra.mxu1 %v716_v56  ;;  %v709_v2 = vld [vmem:[%s2016_s20 + $0x20] sm:$0xff]  ;;  %v707_v4 = vld [vmem:[%s2016_s20 + $0x10] sm:$0xff]  ;;  %v706_v6 = vld [vmem:[%s2016_s20 + $0x8] sm:$0xff] }
  0x67   : > { %627 = vmatpush.msra.mxu0 %v2081_v19  ;;  %1461 = vmatpush.msra.mxu3 %v2081_v19  ;;  %v705_v7 = vld [vmem:[%s2016_s20] sm:$0xff]  ;;  %v819_v41 = vld [vmem:[%s2025_s10 + $0x68] sm:$0xff]  ;;  %v817_v43 = vld [vmem:[%s2025_s10 + $0x58] sm:$0xff] }
  0x68   : > { %730 = vmatpush.msra.mxu1 %v715_v57  ;;  %v813_v47 = vld [vmem:[%s2025_s10 + $0x38] sm:$0xff] }
  0x69   : > { %628 = vmatpush.msra.mxu0 %v2086_v20  ;;  %1462 = vmatpush.msra.mxu3 %v2086_v20 }
  0x6a   : > { %731 = vmatpush.msra.mxu1 %v714_v58 }
  0x6b   : > { %629 = vmatpush.msra.mxu0 %v2091_v21  ;;  %1463 = vmatpush.msra.mxu3 %v2091_v21 }
  0x6c   : > { %732 = vmatpush.msra.mxu1 %v713_v60 }
  0x6d   : > { %630 = vmatpush.msra.mxu0 %v2096_v22  ;;  %1464 = vmatpush.msra.mxu3 %v2096_v22 }
  0x6e   : > { %733 = vmatpush.msra.mxu1 %v712_v61 }
  0x6f   : > { %631 = vmatpush.msra.mxu0 %v2101_v23  ;;  %1465 = vmatpush.msra.mxu3 %v2101_v23 }
  0x70   : > { %734 = vmatpush.msra.mxu1 %v711_v62 }
  0x71   : > { %632 = vmatpush.msra.mxu0 %v2106_v24  ;;  %1466 = vmatpush.msra.mxu3 %v2106_v24 }
  0x72   : > { %735 = vmatpush.msra.mxu1 %v710_v0 }
  0x73   : > { %633 = vmatpush.msra.mxu0 %v2111_v25  ;;  %1467 = vmatpush.msra.mxu3 %v2111_v25 }
  0x74   : > { %736 = vmatpush.msra.mxu1 %v709_v2 }
  0x75   : > { %634 = vmatpush.msra.mxu0 %v2116_v26  ;;  %1468 = vmatpush.msra.mxu3 %v2116_v26 }
  0x76   : > { %737 = vmatpush.msra.mxu1 %v708_v3 }
  0x77   : > { %635 = vmatpush.msra.mxu0 %v2121_v27  ;;  %1469 = vmatpush.msra.mxu3 %v2121_v27 }
  0x78   : > { %738 = vmatpush.msra.mxu1 %v707_v4 }
  0x79   : > { %636 = vmatpush.msra.mxu0 %v2126_v28  ;;  %1470 = vmatpush.msra.mxu3 %v2126_v28 }
  0x7a   : > { %739 = vmatpush.msra.mxu1 %v706_v6 }
  0x7b   : > { %637 = vmatpush.msra.mxu0 %v2131_v29  ;;  %1471 = vmatpush.msra.mxu3 %v2131_v29 }
  0x7c   : > { %740 = vmatpush.msra.mxu1 %v705_v7 }
  0x7d   : > { %638 = vmatpush.msra.mxu0 %v2137_v31  ;;  %1472 = vmatpush.msra.mxu3 %v2137_v31 }
  0x7f   : > { %639 = vmatpush.msra.mxu0 %v2142_v32  ;;  %1473 = vmatpush.msra.mxu3 %v2142_v32 }
  0x80   : > { %640 = vmatmul.f32.vlgmr.msra.gmra.mxu0 %v1421_v33  ;;  %676 = vmatmul.f32.vlgmr.msra.gmra.mxu3 %v1445_v38 }
  0x81   : > { %1474 = vmatpush.msrb.mxu3 %v720_v50  ;;  %v810_v50 = vld [vmem:[%s2025_s10 + $0x20] sm:$0xff] }
  0x83   : > { %1475 = vmatpush.msrb.mxu3 %v719_v51 }
  0x85   : > { %1476 = vmatpush.msrb.mxu3 %v718_v53 }
  0x87   : > { %1477 = vmatpush.msrb.mxu3 %v717_v55  ;;  %v808_v55 = vld [vmem:[%s2025_s10 + $0x10] sm:$0xff] }
  0x88   : > { %643 = vmatmul.f32.gmra.mxu0 %v1422_v34  ;;  %679 = vmatmul.f32.gmra.mxu3 %v1446_v40 }
  0x89   : > { %1478 = vmatpush.msrb.mxu3 %v716_v56  ;;  %v807_v56 = vld [vmem:[%s2025_s10 + $0x8] sm:$0xff] }
  0x8b   : > { %1479 = vmatpush.msrb.mxu3 %v715_v57  ;;  %v806_v57 = vld [vmem:[%s2025_s10] sm:$0xff] }
  0x8d   : > { %1480 = vmatpush.msrb.mxu3 %v714_v58 }
  0x8f   : > { %1481 = vmatpush.msrb.mxu3 %v713_v60 }
  0x90   : > { %646 = vmatmul.f32.gmra.mxu0 %v1425_v36  ;;  %682 = vmatmul.f32.gmra.mxu3 %v1449_v44  ;;  %v815_v44 = vld [vmem:[%s2025_s10 + $0x48] sm:$0xff] }
  0x91   : > { %1482 = vmatpush.msrb.mxu3 %v712_v61 }
  0x93   : > { %1483 = vmatpush.msrb.mxu3 %v711_v62 }
  0x95   : > { %1484 = vmatpush.msrb.mxu3 %v710_v0 }
  0x97   : > { %1485 = vmatpush.msrb.mxu3 %v709_v2 }
  0x98   : > { %649 = vmatmul.f32.gmra.mxu0 %v1426_v39  ;;  %685 = vmatmul.f32.gmra.mxu3 %v1450_v46 }
  0x99   : > { %1486 = vmatpush.msrb.mxu3 %v708_v3 }
  0x9b   : > { %1487 = vmatpush.msrb.mxu3 %v707_v4 }
  0x9d   : > { %1488 = vmatpush.msrb.mxu3 %v706_v6 }
  0x9f   : > { %1489 = vmatpush.msrb.mxu3 %v705_v7 }
  0xa0   : > { %652 = vmatmul.f32.gmra.mxu0 %v1429_v42 }
  0xa8   : > { %655 = vmatmul.f32.gmra.mxu0 %v1430_v45  ;;  %v814_v45 = vld [vmem:[%s2025_s10 + $0x40] sm:$0xff] }
  0xb0   : > { %658 = vmatmul.f32.gmra.mxu0 %v1433_v48  ;;  %v812_v48 = vld [vmem:[%s2025_s10 + $0x30] sm:$0xff] }
  0xb8   : > { %661 = vmatmul.f32.gmra.mxu0 %v1434_v49  ;;  %v811_v49 = vld [vmem:[%s2025_s10 + $0x28] sm:$0xff] }
  0xc0   : > { %664 = vmatmul.f32.gmra.mxu0 %v1437_v54 }
  0xc8   : > { %667 = vmatmul.f32.gmra.mxu0 %v1438_v59 }
  0xd0   : > { %670 = vmatmul.f32.gmra.mxu0 %v1441_v1 }
  0xd8   : > { %673 = vmatmul.f32.gmra.mxu0 %v1442_v5 }
  0xfd   : > { %v641_v8 = vpop.f32.mrf.mxu0 }
  0xfe   : > { %v689_v9 = vadd.f32 %v641_v8, %v2142_v32 }
 0x100   : > { %741 = vmatmul.f32.vlgmr.msra.gmra.mxu1 %v689_v9 }
 0x103   : > { %v677_v30 = vpop.f32.mrf.mxu3 }
 0x104   : > { %v701_v33 = vadd.f32 %v677_v30, %v2081_v19 }
 0x105   : > { %v644_v10 = vpop.f32.mrf.mxu0 }
 0x106   : > { %v690_v11 = vadd.f32 %v644_v10, %v2137_v31  ;;  %777 = vmatmul.f32.vlgmr.msrb.gmra.mxu3 %v701_v33 }
 0x108   : > { %744 = vmatmul.f32.gmra.mxu1 %v690_v11 }
 0x10b   : > { %v680_v35 = vpop.f32.mrf.mxu3 }
 0x10c   : > { %v702_v36 = vadd.f32 %v680_v35, %v2076_v18 }
 0x10d   : > { %v647_v12 = vpop.f32.mrf.mxu0 }
 0x10e   : > { %v691_v13 = vadd.f32 %v647_v12, %v2131_v29  ;;  %780 = vmatmul.f32.gmra.mxu3 %v702_v36 }
 0x110   : > { %747 = vmatmul.f32.gmra.mxu1 %v691_v13 }
 0x113   : > { %v683_v37 = vpop.f32.mrf.mxu3 }
 0x115   : > { %v650_v14 = vpop.f32.mrf.mxu0 }
 0x116   : > { %v692_v15 = vadd.f32 %v650_v14, %v2126_v28  ;;  %v703_v28 = vadd.f32 %v683_v37, %v2071_v17  ;;  %v820_v17 = vld [vmem:[%s2025_s10 + $0x70] sm:$0xff] }
 0x118   : > { %750 = vmatmul.f32.gmra.mxu1 %v692_v15  ;;  %783 = vmatmul.f32.gmra.mxu3 %v703_v28 }
 0x11b   : > { %v686_v38 = vpop.f32.mrf.mxu3 }
 0x11c   : > { %v704_v18 = vadd.f32 %v686_v38, %v2068_v16 }
 0x11d   : > { %v653_v34 = vpop.f32.mrf.mxu0 }
 0x11e   : > { %v693_v32 = vadd.f32 %v653_v34, %v2121_v27 }
 0x120   : > { %753 = vmatmul.f32.gmra.mxu1 %v693_v32  ;;  %786 = vmatmul.f32.gmra.mxu3 %v704_v18 }
 0x125   : > { %v656_v31 = vpop.f32.mrf.mxu0 }
 0x126   : > { %v694_v29 = vadd.f32 %v656_v31, %v2116_v26  ;;  %v821_v26 = vld [vmem:[%s2025_s10 + $0x78] sm:$0xff] }
 0x127   : > { %826 = vmatpush.msra.mxu2 %v821_v26  ;;  %1490 = vmatpush.msra.mxu3 %v821_v26 }
 0x128   : > { %756 = vmatmul.f32.gmra.mxu1 %v694_v29 }
 0x129   : > { %827 = vmatpush.msra.mxu2 %v820_v17  ;;  %1491 = vmatpush.msra.mxu3 %v820_v17 }
 0x12b   : > { %828 = vmatpush.msra.mxu2 %v819_v41  ;;  %1492 = vmatpush.msra.mxu3 %v819_v41 }
 0x12d   : > { %v659_v19 = vpop.f32.mrf.mxu0 }
 0x12e   : > { %v695_v27 = vadd.f32 %v659_v19, %v2111_v25  ;;  %v818_v25 = vld [vmem:[%s2025_s10 + $0x60] sm:$0xff] }
 0x12f   : > { %829 = vmatpush.msra.mxu2 %v818_v25  ;;  %1493 = vmatpush.msra.mxu3 %v818_v25 }
 0x130   : > { %759 = vmatmul.f32.gmra.mxu1 %v695_v27 }
 0x131   : > { %830 = vmatpush.msra.mxu2 %v817_v43  ;;  %1494 = vmatpush.msra.mxu3 %v817_v43 }
 0x135   : > { %v662_v39 = vpop.f32.mrf.mxu0 }
 0x136   : > { %v696_v40 = vadd.f32 %v662_v39, %v2106_v24  ;;  %v816_v24 = vld [vmem:[%s2025_s10 + $0x50] sm:$0xff] }
 0x137   : > { %831 = vmatpush.msra.mxu2 %v816_v24  ;;  %1495 = vmatpush.msra.mxu3 %v816_v24 }
 0x138   : > { %762 = vmatmul.f32.gmra.mxu1 %v696_v40 }
 0x139   : > { %832 = vmatpush.msra.mxu2 %v815_v44  ;;  %1496 = vmatpush.msra.mxu3 %v815_v44 }
 0x13b   : > { %833 = vmatpush.msra.mxu2 %v814_v45  ;;  %1497 = vmatpush.msra.mxu3 %v814_v45  ;;  %v2213_v45 = vld [vmem:[%s523_s27] ss:$0 sm:$0xff] }
 0x13d   : > { %v665_v42 = vpop.f32.mrf.mxu0  ;;  %834 = vmatpush.msra.mxu2 %v813_v47  ;;  %1498 = vmatpush.msra.mxu3 %v813_v47 }
 0x13e   : > { %v697_v16 = vadd.f32 %v665_v42, %v2101_v23 }
 0x13f   : > { %835 = vmatpush.msra.mxu2 %v812_v48  ;;  %1499 = vmatpush.msra.mxu3 %v812_v48 }
 0x140   : > { %765 = vmatmul.f32.gmra.mxu1 %v697_v16 }
 0x141   : > { %836 = vmatpush.msra.mxu2 %v811_v49  ;;  %1500 = vmatpush.msra.mxu3 %v811_v49 }
 0x143   : > { %837 = vmatpush.msra.mxu2 %v810_v50  ;;  %1501 = vmatpush.msra.mxu3 %v810_v50 }
 0x145   : > { %v668_v46 = vpop.f32.mrf.mxu0 }
 0x146   : > { %v698_v23 = vadd.f32 %v668_v46, %v2096_v22  ;;  %v809_v22 = vld [vmem:[%s2025_s10 + $0x18] sm:$0xff] }
 0x147   : > { %838 = vmatpush.msra.mxu2 %v809_v22  ;;  %1502 = vmatpush.msra.mxu3 %v809_v22 }
 0x148   : > { %768 = vmatmul.f32.gmra.mxu1 %v698_v23 }
 0x149   : > { %839 = vmatpush.msra.mxu2 %v808_v55  ;;  %1503 = vmatpush.msra.mxu3 %v808_v55 }
 0x14b   : > { %840 = vmatpush.msra.mxu2 %v807_v56  ;;  %1504 = vmatpush.msra.mxu3 %v807_v56 }
 0x14d   : > { %v671_v51 = vpop.f32.mrf.mxu0  ;;  %841 = vmatpush.msra.mxu2 %v806_v57  ;;  %1505 = vmatpush.msra.mxu3 %v806_v57 }
 0x14e   : > { %v699_v52 = vadd.f32 %v671_v51, %v2091_v21  ;;  %v1627_v21 = vld [vmem:[%s515_s0] ss:$0 sm:$0xff] }
 0x150   : > { %771 = vmatmul.f32.gmra.mxu1 %v699_v52 }
 0x155   : > { %v674_v53 = vpop.f32.mrf.mxu0 }
 0x156   : > { %v700_v54 = vadd.f32 %v674_v53, %v2086_v20 }
 0x158   : > { %774 = vmatmul.f32.gmra.mxu1 %v700_v54 }
 0x17d   : > { %v742_v58 = vpop.f32.mrf.mxu1 }
 0x17e   : > { %v743_v59 = vadd.f32 %v1627_v21, %v742_v58 }
 0x180   : > { %v790_v60 = vmax.f32 %v743_v59, 0.0 }
 0x182   : > { %842 = vmatmul.f32.vlgmr.msra.gmra.mxu2 %v790_v60 }
 0x185   : > { %v745_v20 = vpop.f32.mrf.mxu1 }
 0x186   : > { %v746_v61 = vadd.f32 %v1627_v21, %v745_v20 }
 0x188   : > { %v791_v62 = vmax.f32 %v746_v61, 0.0 }
 0x189   : > { %v778_v6 = vpop.f32.mrf.mxu3 }
 0x18a   : > { %845 = vmatmul.f32.gmra.mxu2 %v791_v62  ;;  %v779_v8 = vadd.f32 %v1627_v21, %v778_v6 }
 0x18c   : > { %v802_v10 = vmax.f32 %v779_v8, 0.0 }
 0x18d   : > { %v748_v63 = vpop.f32.mrf.mxu1 }
 0x18e   : > { %v749_v0 = vadd.f32 %v1627_v21, %v748_v63  ;;  %878 = vmatmul.f32.vlgmr.msra.gmra.mxu3 %v802_v10 }
 0x190   : > { %v792_v1 = vmax.f32 %v749_v0, 0.0 }
 0x191   : > { %v781_v12 = vpop.f32.mrf.mxu3 }
 0x192   : > { %848 = vmatmul.f32.gmra.mxu2 %v792_v1  ;;  %v782_v14 = vadd.f32 %v1627_v21, %v781_v12 }
 0x194   : > { %v803_v30 = vmax.f32 %v782_v14, 0.0 }
 0x195   : > { %v751_v2 = vpop.f32.mrf.mxu1 }
 0x196   : > { %v752_v3 = vadd.f32 %v1627_v21, %v751_v2  ;;  %881 = vmatmul.f32.gmra.mxu3 %v803_v30 }
 0x198   : > { %v793_v4 = vmax.f32 %v752_v3, 0.0 }
 0x19a   : > { %851 = vmatmul.f32.gmra.mxu2 %v793_v4 }
 0x19b   : > { %v784_v34 = vpop.f32.mrf.mxu3 }
 0x19c   : > { %v785_v35 = vadd.f32 %v1627_v21, %v784_v34 }
 0x19d   : > { %v754_v5 = vpop.f32.mrf.mxu1 }
 0x19e   : > { %v755_v7 = vadd.f32 %v1627_v21, %v754_v5  ;;  %v804_v31 = vmax.f32 %v785_v35, 0.0 }
 0x1a0   : > { %v794_v9 = vmax.f32 %v755_v7, 0.0  ;;  %884 = vmatmul.f32.gmra.mxu3 %v804_v31 }
 0x1a2   : > { %854 = vmatmul.f32.gmra.mxu2 %v794_v9 }
 0x1a3   : > { %v787_v37 = vpop.f32.mrf.mxu3 }
 0x1a4   : > { %v788_v19 = vadd.f32 %v1627_v21, %v787_v37 }
 0x1a5   : > { %v757_v11 = vpop.f32.mrf.mxu1 }
 0x1a6   : > { %v758_v13 = vadd.f32 %v1627_v21, %v757_v11  ;;  %v805_v38 = vmax.f32 %v788_v19, 0.0 }
 0x1a8   : > { %v795_v15 = vmax.f32 %v758_v13, 0.0  ;;  %887 = vmatmul.f32.gmra.mxu3 %v805_v38 }
 0x1aa   : > { %857 = vmatmul.f32.gmra.mxu2 %v795_v15 }
 0x1ad   : > { %v760_v33 = vpop.f32.mrf.mxu1 }
 0x1ae   : > { %v761_v32 = vadd.f32 %v1627_v21, %v760_v33 }
 0x1b0   : > { %v796_v36 = vmax.f32 %v761_v32, 0.0 }
 0x1b2   : > { %860 = vmatmul.f32.gmra.mxu2 %v796_v36 }
 0x1b5   : > { %v763_v29 = vpop.f32.mrf.mxu1 }
 0x1b6   : > { %v764_v28 = vadd.f32 %v1627_v21, %v763_v29 }
 0x1b8   : > { %v797_v27 = vmax.f32 %v764_v28, 0.0 }
 0x1ba   : > { %863 = vmatmul.f32.gmra.mxu2 %v797_v27 }
 0x1bd   : > { %v766_v18 = vpop.f32.mrf.mxu1 }
 0x1be   : > { %v767_v39 = vadd.f32 %v1627_v21, %v766_v18 }
 0x1c0   : > { %v798_v40 = vmax.f32 %v767_v39, 0.0 }
 0x1c2   : > { %866 = vmatmul.f32.gmra.mxu2 %v798_v40 }
 0x1c5   : > { %v769_v26 = vpop.f32.mrf.mxu1 }
 0x1c6   : > { %v770_v17 = vadd.f32 %v1627_v21, %v769_v26 }
 0x1c8   : > { %v799_v41 = vmax.f32 %v770_v17, 0.0 }
 0x1ca   : > { %869 = vmatmul.f32.gmra.mxu2 %v799_v41 }
 0x1cd   : > { %v772_v25 = vpop.f32.mrf.mxu1 }
 0x1ce   : > { %v773_v42 = vadd.f32 %v1627_v21, %v772_v25 }
 0x1d0   : > { %v800_v16 = vmax.f32 %v773_v42, 0.0 }
 0x1d2   : > { %872 = vmatmul.f32.gmra.mxu2 %v800_v16 }
 0x1d5   : > { %v775_v43 = vpop.f32.mrf.mxu1 }
 0x1d6   : > { %v776_v24 = vadd.f32 %v1627_v21, %v775_v43 }
 0x1d8   : > { %v801_v44 = vmax.f32 %v776_v24, 0.0 }
 0x1da   : > { %875 = vmatmul.f32.gmra.mxu2 %v801_v44 }
 0x205   : > { %v843_v46 = vpop.f32.mrf.mxu2 }
 0x206   : > { %v844_v23 = vadd.f32 %v2213_v45, %v843_v46 }
 0x208   : > { %v2216_v47 = vmax.f32 %v844_v23, 0.0 }
 0x20a   : > { %908 = vst [vmem:[%s2220_s25] sm:$0xff] %v2216_v47 }
 0x20d   : > { %v846_v48 = vpop.f32.mrf.mxu2 }
 0x20e   : > { %v847_v49 = vadd.f32 %v2213_v45, %v846_v48 }
 0x210   : > { %v2225_v50 = vmax.f32 %v847_v49, 0.0 }
 0x211   : > { %v879_v57 = vpop.f32.mrf.mxu3 }
 0x212   : > { %909 = vst [vmem:[%s2220_s25 + $0x8] sm:$0xff] %v2225_v50  ;;  %v880_v58 = vadd.f32 %v2213_v45, %v879_v57 }
 0x214   : > { %v2238_v60 = vmax.f32 %v880_v58, 0.0 }
 0x215   : > { %v849_v51 = vpop.f32.mrf.mxu2 }
 0x216   : > { %v850_v52 = vadd.f32 %v2213_v45, %v849_v51  ;;  %920 = vst [vmem:[%s2220_s25 + $0x60] sm:$0xff] %v2238_v60 }
 0x218   : > { %v2230_v22 = vmax.f32 %v850_v52, 0.0 }
 0x219   : > { %v882_v61 = vpop.f32.mrf.mxu3 }
 0x21a   : > { %910 = vst [vmem:[%s2220_s25 + $0x10] sm:$0xff] %v2230_v22  ;;  %v883_v63 = vadd.f32 %v2213_v45, %v882_v61 }
 0x21c   : > { %v2245_v1 = vmax.f32 %v883_v63, 0.0 }
 0x21d   : > { %v852_v53 = vpop.f32.mrf.mxu2 }
 0x21e   : > { %v853_v54 = vadd.f32 %v2213_v45, %v852_v53  ;;  %921 = vst [vmem:[%s2220_s25 + $0x68] sm:$0xff] %v2245_v1 }
 0x220   : > { %v894_v55 = vmax.f32 %v853_v54, 0.0 }
 0x222   : > { %911 = vst [vmem:[%s2220_s25 + $0x18] sm:$0xff] %v894_v55 }
 0x223   : > { %v885_v3 = vpop.f32.mrf.mxu3 }
 0x224   : > { %v886_v5 = vadd.f32 %v2213_v45, %v885_v3 }
 0x225   : > { %v855_v56 = vpop.f32.mrf.mxu2 }
 0x226   : > { %v856_v21 = vadd.f32 %v2213_v45, %v855_v56  ;;  %v2252_v7 = vmax.f32 %v886_v5, 0.0 }
 0x228   : > { %v895_v59 = vmax.f32 %v856_v21, 0.0  ;;  %922 = vst [vmem:[%s2220_s25 + $0x70] sm:$0xff] %v2252_v7 }
 0x22a   : > { %912 = vst [vmem:[%s2220_s25 + $0x20] sm:$0xff] %v895_v59 }
 0x22b   : > { %v888_v9 = vpop.f32.mrf.mxu3 }
 0x22c   : > { %v889_v11 = vadd.f32 %v2213_v45, %v888_v9 }
 0x22d   : > { %v858_v20 = vpop.f32.mrf.mxu2 }
 0x22e   : > { %v859_v62 = vadd.f32 %v2213_v45, %v858_v20  ;;  %v2259_v13 = vmax.f32 %v889_v11, 0.0 }
 0x230   : > { %v896_v0 = vmax.f32 %v859_v62, 0.0  ;;  %923 = vst [vmem:[%s2220_s25 + $0x78] sm:$0xff] %v2259_v13 }
 0x232   : > { %913 = vst [vmem:[%s2220_s25 + $0x28] sm:$0xff] %v896_v0 }
 0x235   : > { %v861_v2 = vpop.f32.mrf.mxu2 }
 0x236   : > { %v862_v4 = vadd.f32 %v2213_v45, %v861_v2 }
 0x238   : > { %v897_v6 = vmax.f32 %v862_v4, 0.0 }
 0x23a   : > { %914 = vst [vmem:[%s2220_s25 + $0x30] sm:$0xff] %v897_v6 }
 0x23d   : > { %v864_v8 = vpop.f32.mrf.mxu2 }
 0x23e   : > { %v865_v10 = vadd.f32 %v2213_v45, %v864_v8 }
 0x240   : > { %v898_v12 = vmax.f32 %v865_v10, 0.0 }
 0x242   : > { %915 = vst [vmem:[%s2220_s25 + $0x38] sm:$0xff] %v898_v12 }
 0x245   : > { %v867_v14 = vpop.f32.mrf.mxu2 }
 0x246   : > { %v868_v15 = vadd.f32 %v2213_v45, %v867_v14 }
 0x248   : > { %v899_v30 = vmax.f32 %v868_v15, 0.0 }
 0x24a   : > { %916 = vst [vmem:[%s2220_s25 + $0x40] sm:$0xff] %v899_v30 }
 0x24d   : > { %v870_v33 = vpop.f32.mrf.mxu2 }
 0x24e   : > { %v871_v34 = vadd.f32 %v2213_v45, %v870_v33 }
 0x250   : > { %v900_v32 = vmax.f32 %v871_v34, 0.0 }
 0x252   : > { %917 = vst [vmem:[%s2220_s25 + $0x48] sm:$0xff] %v900_v32 }
 0x255   : > { %v873_v35 = vpop.f32.mrf.mxu2 }
 0x256   : > { %v874_v36 = vadd.f32 %v2213_v45, %v873_v35 }
 0x258   : > { %v901_v31 = vmax.f32 %v874_v36, 0.0 }
 0x25a   : > { %918 = vst [vmem:[%s2220_s25 + $0x50] sm:$0xff] %v901_v31 }
 0x25d   : > { %v876_v29 = vpop.f32.mrf.mxu2 }
 0x25e   : > { %v877_v37 = vadd.f32 %v2213_v45, %v876_v29  ;;  %927 = sbr.rel (%p1402_p3) target bundleno = 614 (0x266), region = 64 }
 0x260   : > { %v902_v28 = vmax.f32 %v877_v37, 0.0 }
 0x262   : > { %919 = vst [vmem:[%s2220_s25 + $0x58] sm:$0xff] %v902_v28 }
 0x263   : > { %v1799_v19 = vmov 0.0  }
 0x264   : > { %928 = vst [vmem:[#allocation4] sm:$0x1] %v1799_v19 }
 0x265   : > { %929 = vst [vmem:[#allocation5] sm:$0x1] %v1799_v19 }
 0x266 PF: > { %v931_v27 = vadd.f32 %v2225_v50, %v2216_v47  ;;  %v955_v38 = vmul.f32 %v2216_v47, %v2216_v47  ;;  %v956_v18 = vmul.f32 %v2225_v50, %v2225_v50  ;;  %v957_v40 = vmul.f32 %v2230_v22, %v2230_v22 }
 0x267   : > { %v958_v17 = vmul.f32 %v894_v55, %v894_v55  ;;  %v959_v42 = vmul.f32 %v895_v59, %v895_v59  ;;  %v960_v24 = vmul.f32 %v896_v0, %v896_v0  ;;  %v961_v46 = vmul.f32 %v897_v6, %v897_v6 }
 0x268   : > { %v932_v39 = vadd.f32 %v931_v27, %v2230_v22  ;;  %v971_v41 = vadd.f32 %v956_v18, %v955_v38  ;;  %v962_v48 = vmul.f32 %v898_v12, %v898_v12  ;;  %v963_v51 = vmul.f32 %v899_v30, %v899_v30 }
 0x269   : > { %v964_v22 = vmul.f32 %v900_v32, %v900_v32  ;;  %v965_v56 = vmul.f32 %v901_v31, %v901_v31  ;;  %v966_v58 = vmul.f32 %v902_v28, %v902_v28  ;;  %v967_v61 = vmul.f32 %v2238_v60, %v2238_v60 }
 0x26a   : > { %v933_v26 = vadd.f32 %v932_v39, %v894_v55  ;;  %v972_v16 = vadd.f32 %v971_v41, %v957_v40  ;;  %v969_v4 = vmul.f32 %v2252_v7, %v2252_v7  ;;  %v970_v8 = vmul.f32 %v2259_v13, %v2259_v13 }
 0x26c   : > { %v934_v25 = vadd.f32 %v933_v26, %v895_v59  ;;  %v973_v44 = vadd.f32 %v972_v16, %v958_v17  ;;  %v954_v29 = vld [vmem:[#allocation5] sm:$0x1] }
 0x26e   : > { %v935_v43 = vadd.f32 %v934_v25, %v896_v0  ;;  %v974_v23 = vadd.f32 %v973_v44, %v959_v42  ;;  %v968_v0 = vmul.f32 %v2245_v1, %v2245_v1 }
 0x270   : > { %v936_v45 = vadd.f32 %v935_v43, %v897_v6  ;;  %v975_v49 = vadd.f32 %v974_v23, %v960_v24 }
 0x272   : > { %v937_v47 = vadd.f32 %v936_v45, %v898_v12  ;;  %v976_v52 = vadd.f32 %v975_v49, %v961_v46 }
 0x274   : > { %v938_v50 = vadd.f32 %v937_v47, %v899_v30  ;;  %v977_v54 = vadd.f32 %v976_v52, %v962_v48 }
 0x276   : > { %v939_v53 = vadd.f32 %v938_v50, %v900_v32  ;;  %v978_v57 = vadd.f32 %v977_v54, %v963_v51  ;;  %v930_v32 = vld [vmem:[#allocation4] sm:$0x1] }
 0x278   : > { %v940_v55 = vadd.f32 %v939_v53, %v901_v31  ;;  %v979_v59 = vadd.f32 %v978_v57, %v964_v22 }
 0x27a   : > { %v941_v21 = vadd.f32 %v940_v55, %v902_v28  ;;  %v980_v62 = vadd.f32 %v979_v59, %v965_v56 }
 0x27c   : > { %v942_v20 = vadd.f32 %v941_v21, %v2238_v60  ;;  %v981_v2 = vadd.f32 %v980_v62, %v966_v58 }
 0x27e   : > { %v943_v63 = vadd.f32 %v942_v20, %v2245_v1  ;;  %v982_v5 = vadd.f32 %v981_v2, %v967_v61 }
 0x280   : > { %v944_v3 = vadd.f32 %v943_v63, %v2252_v7  ;;  %v983_v9 = vadd.f32 %v982_v5, %v968_v0 }
 0x282   : > { %v945_v6 = vadd.f32 %v944_v3, %v2259_v13  ;;  %v984_v10 = vadd.f32 %v983_v9, %v969_v4 }
 0x284   : > { %v946_v60 = vrot.slane %v945_v6, 4  ;;  %v985_v12 = vadd.f32 %v984_v10, %v970_v8 }
 0x286   : > { %v947_v11 = vadd.f32 %v946_v60, %v945_v6  ;;  %v986_v15 = vrot.slane %v985_v12, 4 }
 0x288   : > { %v948_v14 = vrot.slane %v947_v11, 2  ;;  %v987_v30 = vadd.f32 %v986_v15, %v985_v12 }
 0x28a   : > { %v949_v1 = vadd.f32 %v948_v14, %v947_v11  ;;  %v988_v34 = vrot.slane %v987_v30, 2 }
 0x28c   : > { %v950_v33 = vrot.slane %v949_v1, 1  ;;  %v989_v7 = vadd.f32 %v988_v34, %v987_v30 }
 0x28e   : > { %v951_v35 = vadd.f32 %v950_v33, %v949_v1  ;;  %v990_v31 = vrot.slane %v989_v7, 1 }
 0x290   : > { %v952_v36 = vadd.f32 %v951_v35, %v930_v32  ;;  %v991_v37 = vadd.f32 %v990_v31, %v989_v7 }
 0x292   : > { %953 = vst [vmem:[#allocation4] sm:$0x1] %v952_v36  ;;  %v992_v13 = vadd.f32 %v991_v37, %v954_v29 }
 0x294   : > { %993 = vst [vmem:[#allocation5] sm:$0x1] %v992_v13 }
 0x295 PF: > { %p1403_p2 = scmp.ne.s32.totalorder %s1777_s16, 1 }
 0x296   : > { %s1404_s28 = sshll.u32 (!%p1403_p2), %s1773_s15, 7  ;;  %p1405_p4 = scmp.ne.s32.totalorder (!%p1403_p2), %s1773_s15, 0 }
 0x297   : > { %997 = sbr.rel (%p1403_p2) target bundleno = 760 (0x2f8), region = 68  ;;  %s2308_s9 = scalar_lea.vmem (!%p1403_p2), [#allocation3], %s1404_s28 }
 0x29c   : > { %v998_v28 = vld [vmem:[#allocation4] sm:$0x1]  ;;  %v1000_v19 = vld [vmem:[#allocation5] sm:$0x1]  ;;  %v1024_v47 = vld [vmem:[%s2308_s9 + $0x8] sm:$0xff] }
 0x29d   : > { %v999_v27 = vmul.f32 0.00390625, %v998_v28  ;;  %v1001_v38 = vmul.f32 0.00390625, %v1000_v19  ;;  %v1016_v24 = vld [vmem:[%s526_s1] sm:$0x1]  ;;  %v1025_v48 = vld [vmem:[%s2308_s9 + $0x10] sm:$0xff]  ;;  %v1026_v51 = vld [vmem:[%s2308_s9 + $0x18] sm:$0xff]  ;;  %v1131_v28 = vlaneseq }
 0x29e   : > { %v1018_v46 = vld [vmem:[%s529_s2] sm:$0x1]  ;;  %v1028_v21 = vld [vmem:[%s2308_s9 + $0x28] sm:$0xff]  ;;  %v1029_v58 = vld [vmem:[%s2308_s9 + $0x30] sm:$0xff]  ;;  %s1093_s1 = scalar_lea.vmem [#allocation2], %s1404_s28 }
 0x29f   : > { %v1002_v18 = vmul.f32 %v999_v27, %v999_v27  ;;  %v1023_v23 = vld [vmem:[%s2308_s9] sm:$0xff]  ;;  %v1030_v63 = vld [vmem:[%s2308_s9 + $0x38] sm:$0xff]  ;;  %v1032_v6 = vld [vmem:[%s2308_s9 + $0x48] sm:$0xff] }
 0x2a0   : > { %v1027_v55 = vld [vmem:[%s2308_s9 + $0x20] sm:$0xff]  ;;  %v1033_v9 = vld [vmem:[%s2308_s9 + $0x50] sm:$0xff]  ;;  %v1034_v12 = vld [vmem:[%s2308_s9 + $0x58] sm:$0xff] }
 0x2a1   : > { %v1003_v39 = vsub.f32 %v1001_v38, %v1002_v18  ;;  %v1031_v2 = vld [vmem:[%s2308_s9 + $0x40] sm:$0xff]  ;;  %v1036_v32 = vld [vmem:[%s2308_s9 + $0x68] sm:$0xff]  ;;  %v1037_v36 = vld [vmem:[%s2308_s9 + $0x70] sm:$0xff] }
 0x2a2   : > { %v1035_v1 = vld [vmem:[%s2308_s9 + $0x60] sm:$0xff]  ;;  %v1038_v13 = vld [vmem:[%s2308_s9 + $0x78] sm:$0xff] }
 0x2a3   : > { %v1004_v40 = vmax.f32 %v1003_v39, 0.0 }
 0x2a5   : > { %v1005_v26 = vadd.f32 1e-05, %v1004_v40  ;;  %v1132_v40 = vshrl.u32 %v1131_v28, 7 }
 0x2a7   : > { %1629 = vrsqrt.f32 %v1005_v26  ;;  %vm1012_vm0 = vweird.f32 %v1005_v26 }
 0x2ad   : > { %v1630_v17 = vpop.eup %1629 }
 0x2ae   : > { %v1007_v41 = vmul.f32 %v1630_v17, %v1005_v26  ;;  %vm1013_vm1 = vweird.f32 %v1630_v17 }
 0x2af   : > { %vm1014_vm2 = vmor %vm1012_vm0, %vm1013_vm1 }
 0x2b0   : > { %v1008_v25 = vmul.f32 %v1630_v17, %v1007_v41 }
 0x2b2   : > { %v1009_v42 = vmul.f32 0.5, %v1008_v25 }
 0x2b4   : > { %v1010_v16 = vsub.f32 1.5, %v1009_v42 }
 0x2b6   : > { %v1011_v43 = vmul.f32 %v1630_v17, %v1010_v16 }
 0x2b8   : > { %v1015_v44 = vsel %vm1014_vm2, %v1630_v17, %v1011_v43 }
 0x2b9   : > { %v1017_v45 = vmul.f32 %v1016_v24, %v1015_v44 }
 0x2bb   : > { %v1019_v49 = vmul.f32 %v1017_v45, %v999_v27  ;;  %v1040_v50 = vperm.slane %v1017_v45, 0 }
 0x2bd   : > { %v1020_v52 = vsub.f32 %v1018_v46, %v1019_v49  ;;  %v1042_v53 = vmul.f32 %v1040_v50, %v1023_v23  ;;  %v1043_v22 = vmul.f32 %v1040_v50, %v1024_v47  ;;  %v1044_v54 = vmul.f32 %v1040_v50, %v1025_v48 }
 0x2be   : > { %v1045_v57 = vmul.f32 %v1040_v50, %v1026_v51  ;;  %v1046_v62 = vmul.f32 %v1040_v50, %v1027_v55  ;;  %v1047_v0 = vmul.f32 %v1040_v50, %v1028_v21  ;;  %v1048_v5 = vmul.f32 %v1040_v50, %v1029_v58 }
 0x2bf   : > { %v2315_v56 = vperm.slane %v1020_v52, 0  ;;  %v1049_v8 = vmul.f32 %v1040_v50, %v1030_v63  ;;  %v1050_v11 = vmul.f32 %v1040_v50, %v1031_v2  ;;  %v1051_v15 = vmul.f32 %v1040_v50, %v1032_v6 }
 0x2c0   : > { %v1052_v34 = vmul.f32 %v1040_v50, %v1033_v9  ;;  %v1053_v7 = vmul.f32 %v1040_v50, %v1034_v12  ;;  %v1054_v37 = vmul.f32 %v1040_v50, %v1035_v1  ;;  %v1055_v27 = vmul.f32 %v1040_v50, %v1036_v32 }
 0x2c1   : > { %v2320_v59 = vadd.f32 %v2315_v56, %v1042_v53  ;;  %v2323_v20 = vadd.f32 %v2315_v56, %v1043_v22  ;;  %v2326_v61 = vadd.f32 %v2315_v56, %v1044_v54  ;;  %v1064_v4 = vadd.f32 %v2315_v56, %v1045_v57 }
 0x2c2   : > { %v1065_v10 = vadd.f32 %v2315_v56, %v1046_v62  ;;  %v1066_v14 = vadd.f32 %v2315_v56, %v1047_v0  ;;  %v1067_v33 = vadd.f32 %v2315_v56, %v1048_v5  ;;  %v1068_v35 = vadd.f32 %v2315_v56, %v1049_v8 }
 0x2c3   : > { %1077 = vst [vmem:[%s2039_s13] sm:$0xff] %v2320_v59  ;;  %v1110_v3 = vadd.f32 %v2323_v20, %v2320_v59  ;;  %v1069_v29 = vadd.f32 %v2315_v56, %v1050_v11  ;;  %v1070_v19 = vadd.f32 %v2315_v56, %v1051_v15  ;;  %v1071_v18 = vadd.f32 %v2315_v56, %v1052_v34 }
 0x2c4   : > { %1078 = vst [vmem:[%s2039_s13 + $0x8] sm:$0xff] %v2323_v20  ;;  %v1056_v39 = vmul.f32 %v1040_v50, %v1037_v36  ;;  %v1072_v26 = vadd.f32 %v2315_v56, %v1053_v7  ;;  %v1057_v17 = vmul.f32 %v1040_v50, %v1038_v13  ;;  %v1073_v25 = vadd.f32 %v2315_v56, %v1054_v37 }
 0x2c5   : > { %1079 = vst [vmem:[%s2039_s13 + $0x10] sm:$0xff] %v2326_v61  ;;  %v1111_v60 = vadd.f32 %v1110_v3, %v2326_v61  ;;  %v1074_v42 = vadd.f32 %v2315_v56, %v1055_v27 }
 0x2c6   : > { %1080 = vst [vmem:[%s2039_s13 + $0x18] sm:$0xff] %v1064_v4  ;;  %v1075_v43 = vadd.f32 %v2315_v56, %v1056_v39  ;;  %v1076_v24 = vadd.f32 %v2315_v56, %v1057_v17 }
 0x2c7   : > { %v1112_v30 = vadd.f32 %v1111_v60, %v1064_v4  ;;  %1081 = vst [vmem:[%s2039_s13 + $0x20] sm:$0xff] %v1065_v10 }
 0x2c8   : > { %1082 = vst [vmem:[%s2039_s13 + $0x28] sm:$0xff] %v1066_v14 }
 0x2c9   : > { %v1113_v31 = vadd.f32 %v1112_v30, %v1065_v10  ;;  %1083 = vst [vmem:[%s2039_s13 + $0x30] sm:$0xff] %v1067_v33 }
 0x2ca   : > { %1084 = vst [vmem:[%s2039_s13 + $0x38] sm:$0xff] %v1068_v35 }
 0x2cb   : > { %v1114_v38 = vadd.f32 %v1113_v31, %v1066_v14  ;;  %1085 = vst [vmem:[%s2039_s13 + $0x40] sm:$0xff] %v1069_v29 }
 0x2cc   : > { %1086 = vst [vmem:[%s2039_s13 + $0x48] sm:$0xff] %v1070_v19 }
 0x2cd   : > { %v1115_v41 = vadd.f32 %v1114_v38, %v1067_v33  ;;  %1087 = vst [vmem:[%s2039_s13 + $0x50] sm:$0xff] %v1071_v18 }
 0x2ce   : > { %1088 = vst [vmem:[%s2039_s13 + $0x58] sm:$0xff] %v1072_v26 }
 0x2cf   : > { %v1116_v16 = vadd.f32 %v1115_v41, %v1068_v35  ;;  %1089 = vst [vmem:[%s2039_s13 + $0x60] sm:$0xff] %v1073_v25 }
 0x2d0   : > { %1090 = vst [vmem:[%s2039_s13 + $0x68] sm:$0xff] %v1074_v42 }
 0x2d1   : > { %v1117_v44 = vadd.f32 %v1116_v16, %v1069_v29  ;;  %1091 = vst [vmem:[%s2039_s13 + $0x70] sm:$0xff] %v1075_v43 }
 0x2d2   : > { %1092 = vst [vmem:[%s2039_s13 + $0x78] sm:$0xff] %v1076_v24 }
 0x2d3   : > { %v1118_v45 = vadd.f32 %v1117_v44, %v1070_v19  ;;  %1094 = vst [vmem:[%s1093_s1] sm:$0xff] %v2320_v59 }
 0x2d4   : > { %1095 = vst [vmem:[%s1093_s1 + $0x8] sm:$0xff] %v2323_v20 }
 0x2d5   : > { %v1119_v46 = vadd.f32 %v1118_v45, %v1071_v18  ;;  %1096 = vst [vmem:[%s1093_s1 + $0x10] sm:$0xff] %v2326_v61 }
 0x2d6   : > { %1097 = vst [vmem:[%s1093_s1 + $0x18] sm:$0xff] %v1064_v4 }
 0x2d7   : > { %v1120_v23 = vadd.f32 %v1119_v46, %v1072_v26  ;;  %1098 = vst [vmem:[%s1093_s1 + $0x20] sm:$0xff] %v1065_v10 }
 0x2d8   : > { %1099 = vst [vmem:[%s1093_s1 + $0x28] sm:$0xff] %v1066_v14 }
 0x2d9   : > { %v1121_v47 = vadd.f32 %v1120_v23, %v1073_v25  ;;  %1100 = vst [vmem:[%s1093_s1 + $0x30] sm:$0xff] %v1067_v33 }
 0x2da   : > { %1101 = vst [vmem:[%s1093_s1 + $0x38] sm:$0xff] %v1068_v35 }
 0x2db   : > { %v1122_v48 = vadd.f32 %v1121_v47, %v1074_v42  ;;  %1102 = vst [vmem:[%s1093_s1 + $0x40] sm:$0xff] %v1069_v29 }
 0x2dc   : > { %1103 = vst [vmem:[%s1093_s1 + $0x48] sm:$0xff] %v1070_v19 }
 0x2dd   : > { %v1123_v49 = vadd.f32 %v1122_v48, %v1075_v43  ;;  %1104 = vst [vmem:[%s1093_s1 + $0x50] sm:$0xff] %v1071_v18 }
 0x2de   : > { %1105 = vst [vmem:[%s1093_s1 + $0x58] sm:$0xff] %v1072_v26 }
 0x2df   : > { %v1124_v50 = vadd.f32 %v1123_v49, %v1076_v24  ;;  %1106 = vst [vmem:[%s1093_s1 + $0x60] sm:$0xff] %v1073_v25 }
 0x2e0   : > { %1107 = vst [vmem:[%s1093_s1 + $0x68] sm:$0xff] %v1074_v42 }
 0x2e1   : > { %v1125_v51 = vrot.slane %v1124_v50, 4  ;;  %1108 = vst [vmem:[%s1093_s1 + $0x70] sm:$0xff] %v1075_v43 }
 0x2e2   : > { %1109 = vst [vmem:[%s1093_s1 + $0x78] sm:$0xff] %v1076_v24 }
 0x2e3   : > { %v1126_v52 = vadd.f32 %v1125_v51, %v1124_v50 }
 0x2e5   : > { %v1127_v53 = vrot.slane %v1126_v52, 2 }
 0x2e7   : > { %v1128_v22 = vadd.f32 %v1127_v53, %v1126_v52  ;;  %1136 = sbr.rel (%p1405_p4) target bundleno = 750 (0x2ee), region = 72 }
 0x2e9   : > { %v1129_v54 = vrot.slane %v1128_v22, 1 }
 0x2eb   : > { %v1130_v55 = vadd.f32 %v1129_v54, %v1128_v22 }
 0x2ec   : > { %v1800_v56 = vmov 0.0  }
 0x2ed   : > { %1137 = vst [vmem:[%s2041_s26] sm:$0x3] %v1800_v56 }
 0x2ee PF: > { %v1139_v21 = vstv %s1773_s15 }
 0x2ef   : > { %vm1140_vm3 = vcmp.eq.s32.totalorder %v1132_v40, %v1139_v21 }
 0x2f0   : > { %v1143_v58 = vsel %vm1140_vm3, %v1130_v55, 0.0 }
 0x2f4   : > { %v1138_v57 = vld [vmem:[%s2041_s26] sm:$0x3] }
 0x2f5   : > { %v1144_v59 = vadd.f32 %v1143_v58, %v1138_v57 }
 0x2f7   : > { %1145 = vst [vmem:[%s2041_s26] sm:$0x3] %v1144_v59 }
 0x2f8 PF: > { %s2537_s2 = sld [smem:[#allocation16_spill]]  ;;  %s1159_s14 = smul.u32 %s1773_s15, %s1777_s16 }
 0x2f9   : > { %s1167_s30 = sshll.u32 %s2039_s13, 4  ;;  %s2539_s11 = sld [smem:[#allocation34_spill]]  ;;  %s1168_s30 = int_to_ptr.vmem [resolvable:$true] %s1167_s30 }
 0x2fa   : > { %s1418_s12 = sshll.u32 %s1159_s14, 5  ;;  %s1411_s25 = sshll.u32 %s1781_s17, 1 }
 0x2fb   : > { %s1164_s8 = sadd.s32 %s1781_s17, %s1418_s12  ;;  %s2541_s23 = sld [smem:[#allocation35_spill]] }
 0x2fc   : > { %s1410_s18 = sshll.u32 %s1164_s8, 3 }
 0x2fe   : > { %s2542_s27 = sand.u32 1, %s2537_s2  }
 0x2ff   : > { %s2540_s22 = smov %s2539_s11  ;;  %s1166_s0 = scalar_lea.hbm %s2539_s11, %s1410_s18 }
 0x300   : > { %s1169_s10 = sshll.u32 %s1166_s0, 4  ;;  %s1147_s9 = scalar_lea.sflag [#allocation7], %s2542_s27  ;;  %s1170_s10 = int_to_ptr.hbm [resolvable:$true] %s1169_s10 }
 0x301   : > { %s1182_s29 = scalar_lea.hbm %s2541_s23, %s1411_s25  ;;  %s1645_s15 = sshra.s32 %s1170_s10, 4  ;;  %s1646_s15 = int_to_ptr.hbm [resolvable:$true] %s1645_s15 }
 0x302   : > { %s1647_s13 = scalar_lea.hbm %s1646_s15, 128  ;;  %s1651_s14 = scalar_lea.hbm %s2540_s22, 512 }
 0x303   : > { %p1648_p6 = scmp.ne.s32.totalorder %s1646_s15, %s1647_s13  ;;  %p1652_p11 = scmp.lt.s32.totalorder %s1646_s15, %s2540_s22 }
 0x304   : > { %p1653_p12 = scmp.lt.s32.totalorder %s1651_s14, %s1647_s13 }
 0x305   : > { %p1649_p8 = pnand %p1648_p6, %p1940_p5 }
 0x306   : > { %p1654_p13 = por %p1653_p12, %p1652_p11 }
 0x307   : > { %p1650_p9 = pneg %p1649_p8 }
 0x309   : > { %p1655_p0 = pnand %p1654_p13, %p1650_p9 }
 0x30b   : > { %1658 = shalt.err (!%p1655_p0)
}
 0x30c   : > { %s1801_s2 = smov 128   ;;  %s2543_s8 = sld [smem:[#allocation13_spill]] }
 0x30d   : > { %s1802_s21 = smov 256   ;;  %s1803_s24 = smov 8  }
 0x30e   : > { %1506 = dma.vmem_to_hbm [thread:$0]  (%p1940_p5), %s1168_s30, 2048, %s1170_s10, %s1147_s9, %s1801_s2, %s1802_s21, %s1803_s24  }
 0x30f   : > { %s1184_s11 = sshll.u32 %s2041_s26, 4  ;;  %s1186_s0 = sshll.u32 %s1182_s29, 4  ;;  %s1185_s11 = int_to_ptr.vmem [resolvable:$true] %s1184_s11  ;;  %s1187_s0 = int_to_ptr.hbm [resolvable:$true] %s1186_s0 }
 0x310   : > { %s1673_s20 = sshra.s32 %s1187_s0, 4  ;;  %s1679_s16 = scalar_lea.hbm %s2541_s23, 4  ;;  %s1674_s20 = int_to_ptr.hbm [resolvable:$true] %s1673_s20 }
 0x311   : > { %s1675_s27 = scalar_lea.hbm %s1674_s20, 2  ;;  %p1680_p5 = scmp.lt.s32.totalorder %s1674_s20, %s2541_s23 }
 0x312   : > { %s2545_s25 = sand.u32 1, %s2543_s8   ;;  %p1676_p3 = scmp.ne.s32.totalorder %s1674_s20, %s1675_s27 }
 0x313   : > { %s1152_s28 = scalar_lea.sflag [#allocation9], %s2545_s25  ;;  %p1681_p6 = scmp.lt.s32.totalorder %s1679_s16, %s1675_s27 }
 0x314   : > { %p1677_p2 = pnand %p1676_p3, %p1966_p10 }
 0x315   : > { %p1682_p8 = por %p1681_p6, %p1680_p5 }
 0x316   : > { %p1678_p4 = pneg %p1677_p2 }
 0x318   : > { %p1683_p9 = pnand %p1682_p8, %p1678_p4 }
 0x31a   : > { %1686 = shalt.err (!%p1683_p9)
}
 0x31b   : > { %1507 = dma.vmem_to_hbm [thread:$0]  (%p1966_p10), %s1185_s11, 32, %s1187_s0, %s1152_s28  }
 0x31c PF: > { %s2546_s26 = sld [smem:[#allocation21_spill]] }
 0x31d   : > { %s2547_s30 = sld [smem:[#allocation15_spill]] }
 0x322   : > { %p1517_p11 = scmp.ge.s32.totalorder %s2546_s26, 2 }
 0x323   : > { %s1198_s29 = sand.u32 1, %s2547_s30  }
 0x324   : > { %p1511_p12 = pnand %p1517_p11, %p1955_p7  ;;  %s1199_s9 = scalar_lea.sflag [#allocation7], %s1198_s29 }
 0x326   : > { %p1512_p13 = pneg %p1511_p12 }
 0x328   : > { %1740 = dma.done.wait (%p1512_p13), %s1199_s9, 2048  }
 0x329   : > { %1742 = vsyncadd (%p1512_p13), %s1199_s9, 4294965248  ;;  %s2549_s14 = sld [smem:[#allocation12_spill]]  ;;  %p1514_p0 = pnand %p1517_p11, %p1977_p1 }
 0x32b   : > { %p1515_p3 = pneg %p1514_p0 }
 0x32f   : > { %s1208_s17 = sand.u32 1, %s2549_s14  }
 0x330   : > { %s1209_s2 = scalar_lea.sflag [#allocation9], %s1208_s17 }
 0x331   : > { %1744 = dma.done.wait (%p1515_p3), %s1209_s2, 32  }
 0x332   : > { %1746 = vsyncadd (%p1515_p3), %s1209_s2, 4294967264  ;;  %s26_s21 = sadd.s32 1, %s2546_s26   ;;  %s2552_s30 = sld [smem:[#allocation13_spill]] }
 0x333   : > { %p2426_p10 = scmp.ge.s32.totalorder %s26_s21, 10   ;;  %s2553_s10 = sld [smem:[#allocation14_spill]] }
 0x334   : > { %s2554_s11 = sld [smem:[#allocation29_spill]] }
 0x335   : > { %s2555_s12 = sld [smem:[#allocation16_spill]] }
 0x336   : > { %s2556_s13 = sld [smem:[#allocation17_spill]] }
 0x337   : > { %s2557_s14 = sld [smem:[#allocation30_spill]] }
 0x338   : > { %s2558_s15 = sld [smem:[#allocation18_spill]] }
 0x339   : > { %s2559_s16 = sld [smem:[#allocation19_spill]]  ;;  %25 = sbr.rel (!%p2426_p10) target bundleno = 16 (0x10), region = 150 }
 0x33a   : > { %s2560_s17 = sld [smem:[#allocation20_spill]] }
 0x33b   : > { %s2561_s18 = sld [smem:[#allocation22_spill]] }
 0x33c   : > { %s2562_s19 = sld [smem:[#allocation24_spill]] }
 0x33d   : > { %s2563_s20 = sld [smem:[#allocation26_spill]] }
 0x33e   :  { %1215 = vsyncpa [#allocation7], 1 }
 0x33f   :  { %1217 = vsyncpa [#allocation7 + $0x1], 1 }
 0x340   :  { %1218 = vsyncpa [#allocation9], 1 }
 0x341   :  { %1220 = vsyncpa [#allocation9 + $0x1], 1 }

</bundles_post_ra>
